<compile_context>
chip_gen: v5e
topology: v5e:2x2
jax: 0.10.0
libtpu: 0.0.40
codegen_flags: <defaults>
</compile_context>

<pallas_src>
import functools

import jax
import jax.numpy as jnp
import numpy as np
from jax.experimental import pallas as pl
from jax.experimental.pallas import tpu as pltpu

EPS = 1e-8  # torch.nn.CosineSimilarity default eps (applied to ||x|| * ||c||)


def _round_up(x, m):
    return (x + m - 1) // m * m


def _pass1_vmem_bytes(tb, dp, kp):
    # double-buffered x / dp_centroid blocks, resident centroid + new_centroid,
    # sim / index outputs, counts scratch (all f32).
    return 4 * (2 * tb * dp      # datapoints block (x2 buffers)
                + 2 * kp * dp    # centroid block
                + 2 * kp         # centroid inverse norms
                + 2 * tb * kp    # sim output block
                + 4 * tb         # index outputs (row + lane layouts)
                + 2 * tb * dp    # dp_centroid output block
                + kp * dp        # new_centroid accumulator (resident)
                + kp)            # counts scratch


def _assign_update_kernel(x_ref, c_ref, cinv_ref,
                          sim_ref, idxr_ref, idxc_ref, dpcent_ref, newcent_ref,
                          counts_ref, *, tb, kpad, k_real, b_real):
    i = pl.program_id(0)
    nb = pl.num_programs(0)

    x = x_ref[...]                                   # [TB, Dp] f32
    c = c_ref[...]                                   # [Kpad, Dp] f32
    x_b = x.astype(jnp.bfloat16)
    c_b = c.astype(jnp.bfloat16)

    # Raw dot products on the MXU (bf16 operands, f32 accumulation); contract over D
    # without materializing c.T.
    raw = jax.lax.dot_general(x_b, c_b, (((1,), (1,)), ((), ())),
                              preferred_element_type=jnp.float32)       # [TB, Kpad]

    # cosine = raw / max(||x||*||c||, eps); 1/max(a*b, eps) == min((1/a)*(1/b), 1/eps),
    # so only per-row rsqrt (EUP) + a cheap VPU scale of the [TB, Kpad] result is needed.
    inv_xn = jax.lax.rsqrt(jnp.sum(x * x, axis=-1, keepdims=True))      # [TB, 1] (+inf for zero rows)
    inv_den = jnp.minimum(inv_xn * cinv_ref[...], 1.0 / EPS)            # [TB, Kpad]
    sim = raw * inv_den
    sim_ref[...] = sim

    # Cluster assignment: first index attaining the row max over the K real centroids.
    col = jax.lax.broadcasted_iota(jnp.int32, (tb, kpad), 1)
    colf = col.astype(jnp.float32)
    sim_m = jnp.where(col < k_real, sim, -jnp.inf)
    row_max = jnp.max(sim_m, axis=-1, keepdims=True)                    # [TB, 1]
    dp_idx = jnp.min(jnp.where(sim_m == row_max, colf, float(kpad)),
                     axis=-1, keepdims=True)                            # [TB, 1] f32 (integer valued)
    onehot = (colf == dp_idx).astype(jnp.float32)                       # [TB, Kpad]

    # Rows past the true batch size (wrapper zero-padding) must not contribute.
    g_row = i * tb + jax.lax.broadcasted_iota(jnp.int32, (tb, 1), 0)    # [TB, 1]
    valid = g_row < b_real                                              # [TB, 1] bool
    onehot = jnp.where(valid, onehot, 0.0)
    onehot_b = onehot.astype(jnp.bfloat16)                              # exactly representable

    # Cluster index in both layouts for pass 2 (row layout: sublanes, lane layout via a
    # tiny matmul instead of a transpose).
    idxr_ref[...] = jnp.where(valid, dp_idx, -1.0)                      # [TB, 1]
    kvals = colf[:1, :]                                                 # [1, Kpad] = 0..Kpad-1
    idxc_ref[...] = jax.lax.dot_general(kvals, onehot, (((1,), (1,)), ((), ())),
                                        preferred_element_type=jnp.float32)  # [1, TB]

    # dp_centroid = gather(centroid, dp_index) via the one-hot matmul.
    dpcent_ref[...] = jnp.dot(onehot_b, c_b,
                              preferred_element_type=jnp.float32)       # [TB, Dp]

    # k-means update: accumulate per-cluster sums and member counts across batch tiles.
    part = jax.lax.dot_general(onehot_b, x_b, (((0,), (0,)), ((), ())),
                               preferred_element_type=jnp.float32)      # [Kpad, Dp]
    ones_col = jnp.ones((tb, 1), jnp.bfloat16)
    cnt = jax.lax.dot_general(onehot_b, ones_col, (((0,), (0,)), ((), ())),
                              preferred_element_type=jnp.float32)       # [Kpad, 1]

    @pl.when(i == 0)
    def _init():
        newcent_ref[...] = jnp.zeros_like(newcent_ref)
        counts_ref[...] = jnp.zeros_like(counts_ref)

    newcent_ref[...] += part
    counts_ref[...] += cnt

    @pl.when(i == nb - 1)
    def _finalize():
        empty = (counts_ref[...] == 0.0).astype(jnp.float32)            # [Kpad, 1]
        newcent_ref[...] = newcent_ref[...] + c * empty                 # keep old centroid for empty clusters


def _cluster_kernel(idxr_ref, idxc_ref, out_ref, *, tb):
    # dp_cluster tile = (index[i_rows] == index[j_cols]) with the global diagonal zeroed
    # (pure VPU compare/select; replaces the onehot @ onehot.T MXU pass).
    i = pl.program_id(0)
    j = pl.program_id(1)
    same = (idxr_ref[...] == idxc_ref[...]).astype(jnp.float32)         # [TB, TB]
    g_row = i * tb + jax.lax.broadcasted_iota(jnp.int32, (tb, tb), 0)
    g_col = j * tb + jax.lax.broadcasted_iota(jnp.int32, (tb, tb), 1)
    out_ref[...] = jnp.where(g_row == g_col, 0.0, same)                 # fill_diagonal_(0)


def kmeans_cluster_forward(datapoints, centroid, *, tile_b=None):
    """datapoints: [B, D] f32, centroid: [K, D] f32.
    Returns (new_centroid [K, D], dp_cluster [B, B], dp_centroid [B, D], intra_cos_sim [B, K])."""
    datapoints = datapoints.astype(jnp.float32)
    centroid = centroid.astype(jnp.float32)
    B, D = datapoints.shape
    K, D2 = centroid.shape
    assert D == D2

    Dp = _round_up(D, 128)
    Kp = _round_up(max(K, 1), 128)                  # pad K to a full lane width
    if tile_b is None:
        # largest 128-multiple batch tile (<= 512) whose working set stays well in VMEM
        tile_b = 512
        while tile_b > 128 and _pass1_vmem_bytes(tile_b, Dp, Kp) > (24 << 20):
            tile_b //= 2
    TB = min(_round_up(B, 128), _round_up(tile_b, 128))
    Bp = _round_up(B, TB)
    nb = Bp // TB

    x_p = jnp.pad(datapoints, ((0, Bp - B), (0, Dp - D)))
    c_p = jnp.pad(centroid, ((0, Kp - K), (0, Dp - D)))
    # Per-centroid 1/||c|| precomputed in lane layout (+inf for the zero padded rows; the
    # kernel clamps the product of inverse norms at 1/eps, matching torch's eps handling).
    c_inv = jax.lax.rsqrt(jnp.sum(c_p * c_p, axis=-1, keepdims=True)).reshape(1, Kp)

    vmem1 = min(64 << 20, max(32 << 20, int(1.5 * _pass1_vmem_bytes(TB, Dp, Kp)) + (4 << 20)))
    cost1 = pl.CostEstimate(
        flops=int(6 * Bp * Dp * Kp + 6 * Bp * Kp + 4 * Bp * Dp),
        transcendentals=int(Bp),
        bytes_accessed=int(4 * (2 * Bp * Dp + 2 * Kp * Dp + Bp * Kp + 3 * Bp + Kp)))

    kernel1 = functools.partial(_assign_update_kernel, tb=TB, kpad=Kp, k_real=K, b_real=B)
    sim_p, idx_row, idx_col, dpcent_p, newcent_p = pl.pallas_call(
        kernel1,
        out_shape=(
            jax.ShapeDtypeStruct((Bp, Kp), jnp.float32),    # intra_cos_sim (padded)
            jax.ShapeDtypeStruct((Bp, 1), jnp.float32),     # cluster index, row layout
            jax.ShapeDtypeStruct((1, Bp), jnp.float32),     # cluster index, lane layout
            jax.ShapeDtypeStruct((Bp, Dp), jnp.float32),    # dp_centroid (padded)
            jax.ShapeDtypeStruct((Kp, Dp), jnp.float32),    # updated centroid (padded)
        ),
        grid=(nb,),
        in_specs=[
            pl.BlockSpec((TB, Dp), lambda i: (i, 0)),
            pl.BlockSpec((Kp, Dp), lambda i: (0, 0)),       # resident centroid
            pl.BlockSpec((1, Kp), lambda i: (0, 0)),
        ],
        out_specs=(
            pl.BlockSpec((TB, Kp), lambda i: (i, 0)),
            pl.BlockSpec((TB, 1), lambda i: (i, 0)),
            pl.BlockSpec((1, TB), lambda i: (0, i)),
            pl.BlockSpec((TB, Dp), lambda i: (i, 0)),
            pl.BlockSpec((Kp, Dp), lambda i: (0, 0)),       # accumulator: same block every step
        ),
        scratch_shapes=[pltpu.VMEM((Kp, 1), jnp.float32)],  # member counts
        compiler_params=pltpu.CompilerParams(
            dimension_semantics=("arbitrary",),             # batch axis carries the centroid accumulation
            vmem_limit_bytes=vmem1),
        cost_estimate=cost1,
    )(x_p, c_p, c_inv)

    vmem2 = min(64 << 20, max(32 << 20, 4 * (2 * TB * TB + 8 * TB) + (4 << 20)))
    cost2 = pl.CostEstimate(flops=int(3 * Bp * Bp), transcendentals=0,
                            bytes_accessed=int(4 * (Bp * Bp + 2 * Bp * nb)))
    kernel2 = functools.partial(_cluster_kernel, tb=TB)
    cluster_p = pl.pallas_call(
        kernel2,
        out_shape=jax.ShapeDtypeStruct((Bp, Bp), jnp.float32),
        grid=(nb, nb),
        in_specs=[pl.BlockSpec((TB, 1), lambda i, j: (i, 0)),
                  pl.BlockSpec((1, TB), lambda i, j: (0, j))],
        out_specs=pl.BlockSpec((TB, TB), lambda i, j: (i, j)),
        compiler_params=pltpu.CompilerParams(
            dimension_semantics=("parallel", "parallel"),   # shards across both TCs on v7x
            vmem_limit_bytes=vmem2),
        cost_estimate=cost2,
    )(idx_row, idx_col)

    return (newcent_p[:K, :D], cluster_p[:B, :B], dpcent_p[:B, :D], sim_p[:B, :K])


if __name__ == "__main__":
    # Small deterministic example: a batch of sentence embeddings and K cluster centroids.
    B, D, K = 256, 192, 8
    key = jax.random.PRNGKey(0)
    k_dp, k_cent = jax.random.split(key)
    datapoints = jax.random.normal(k_dp, (B, D), dtype=jnp.float32)
    centroid = jax.random.normal(k_cent, (K, D), dtype=jnp.float32)

    new_centroid, dp_cluster, dp_centroid, sim = jax.block_until_ready(
        kmeans_cluster_forward(datapoints, centroid, tile_b=128))  # 2 batch tiles -> exercises accumulation

    assert new_centroid.shape == (K, D)
    assert dp_cluster.shape == (B, B)
    assert dp_centroid.shape == (B, D)
    assert sim.shape == (B, K)

    # Cosine similarity vs a pure-JAX f32 reference (bf16 MXU operands -> ~1e-3 abs error).
    num = datapoints @ centroid.T
    den = jnp.maximum(jnp.linalg.norm(datapoints, axis=-1, keepdims=True)
                      * jnp.linalg.norm(centroid, axis=-1, keepdims=True).T, EPS)
    sim_ref = num / den
    np.testing.assert_allclose(np.asarray(sim), np.asarray(sim_ref), atol=1e-2, rtol=0)

    # Assignment-dependent outputs, derived from the kernel's own sim so exact ties match.
    idx = jnp.argmax(sim, axis=-1)
    onehot = jax.nn.one_hot(idx, K, dtype=jnp.float32)
    cluster_ref = (onehot @ onehot.T) * (1.0 - jnp.eye(B, dtype=jnp.float32))
    np.testing.assert_allclose(np.asarray(dp_cluster), np.asarray(cluster_ref), atol=0.0, rtol=0)

    dpcent_ref = centroid[idx]
    np.testing.assert_allclose(np.asarray(dp_centroid), np.asarray(dpcent_ref), atol=0.1, rtol=0)

    data = onehot.T @ datapoints
    counts = onehot.sum(axis=0)
    newcent_ref = data + centroid * (counts == 0.0)[:, None]
    np.testing.assert_allclose(np.asarray(new_centroid), np.asarray(newcent_ref), atol=0.2, rtol=0)

    print("KERNEL_OK")
</pallas_src>

<mosaic_0001>
module attributes {stable_mosaic.version = 11 : i64} {
  func.func @_assign_update_kernel(%arg0: i32, %arg1: memref<128x256xf32, #tpu.memory_space<vmem>>, %arg2: memref<128x256xf32, #tpu.memory_space<vmem>>, %arg3: memref<1x128xf32, #tpu.memory_space<vmem>>, %arg4: memref<128x128xf32, #tpu.memory_space<vmem>>, %arg5: memref<128x1xf32, #tpu.memory_space<vmem>>, %arg6: memref<1x128xf32, #tpu.memory_space<vmem>>, %arg7: memref<128x256xf32, #tpu.memory_space<vmem>>, %arg8: memref<128x256xf32, #tpu.memory_space<vmem>>, %arg9: memref<128x1xf32, #tpu.memory_space<vmem>>) attributes {dimension_semantics = [#tpu.dimension_semantics<arbitrary>], iteration_bounds = array<i64: 2>, scalar_prefetch = 0 : i64, scratch_operands = 1 : i64, tpu.core_type = #tpu.core_type<tc>, window_params = [{transform_indices = @transform_0, window_bounds = array<i64: 128, 256>}, {pipeline_mode = #tpu.pipeline_mode<synchronous>, transform_indices = @transform_1, window_bounds = array<i64: 128, 256>}, {pipeline_mode = #tpu.pipeline_mode<synchronous>, transform_indices = @transform_2, window_bounds = array<i64: 1, 128>}, {transform_indices = @transform_3, window_bounds = array<i64: 128, 128>}, {transform_indices = @transform_4, window_bounds = array<i64: 128, 1>}, {transform_indices = @transform_5, window_bounds = array<i64: 1, 128>}, {transform_indices = @transform_6, window_bounds = array<i64: 128, 256>}, {pipeline_mode = #tpu.pipeline_mode<synchronous>, transform_indices = @transform_7, window_bounds = array<i64: 128, 256>}]} {
    %c0 = arith.constant 0 : index
    %c0_0 = arith.constant 0 : index
    %0 = vector.load %arg1[%c0, %c0_0] : memref<128x256xf32, #tpu.memory_space<vmem>>, vector<128x256xf32>
    %c0_1 = arith.constant 0 : index
    %c0_2 = arith.constant 0 : index
    %1 = vector.load %arg2[%c0_1, %c0_2] : memref<128x256xf32, #tpu.memory_space<vmem>>, vector<128x256xf32>
    %2 = arith.truncf %0 : vector<128x256xf32> to vector<128x256xbf16>
    %3 = arith.truncf %1 : vector<128x256xf32> to vector<128x256xbf16>
    %cst = arith.constant dense<0.000000e+00> : vector<128x128xf32>
    %4 = tpu.matmul %2, %3, %cst {dimension_numbers = #tpu.dot_dimension_numbers<[1], [1], [0], [0], [0, 0, 1, 0], [], []>} : vector<128x256xbf16>, vector<128x256xbf16>, vector<128x128xf32> -> vector<128x128xf32>
    %5 = arith.mulf %0, %0 : vector<128x256xf32>
    %cst_3 = arith.constant dense<0.000000e+00> : vector<128xf32>
    %6 = vector.multi_reduction <add>, %5, %cst_3 [1] : vector<128x256xf32> to vector<128xf32>
    %7 = vector.shape_cast %6 : vector<128xf32> to vector<128x1xf32>
    %8 = math.rsqrt %7 : vector<128x1xf32>
    %c0_4 = arith.constant 0 : index
    %c0_5 = arith.constant 0 : index
    %9 = vector.load %arg3[%c0_4, %c0_5] : memref<1x128xf32, #tpu.memory_space<vmem>>, vector<1x128xf32>
    %10 = vector.broadcast %8 : vector<128x1xf32> to vector<128x128xf32>
    %11 = vector.broadcast %9 : vector<1x128xf32> to vector<128x128xf32>
    %12 = arith.mulf %10, %11 : vector<128x128xf32>
    %cst_6 = arith.constant 1.000000e+08 : f32
    %13 = vector.broadcast %cst_6 : f32 to vector<128x128xf32>
    %14 = arith.minimumf %12, %13 : vector<128x128xf32>
    %15 = arith.mulf %4, %14 : vector<128x128xf32>
    %c0_7 = arith.constant 0 : index
    %c0_8 = arith.constant 0 : index
    %16 = vector.load %arg4[%c0_7, %c0_8] : memref<128x128xf32, #tpu.memory_space<vmem>>, vector<128x128xf32>
    tpu.vector_store %arg4[%c0_7, %c0_8], %15 {strides = array<i32>} : memref<128x128xf32, #tpu.memory_space<vmem>>, vector<128x128xf32>,
    %17 = tpu.iota {dimensions = array<i32: 1>} : vector<128x128xi32>
    %18 = arith.sitofp %17 : vector<128x128xi32> to vector<128x128xf32>
    %c8_i32 = arith.constant 8 : i32
    %19 = vector.broadcast %c8_i32 : i32 to vector<128x128xi32>
    %20 = arith.cmpi slt, %17, %19 : vector<128x128xi32>
    %cst_9 = arith.constant 0xFF800000 : f32
    %21 = vector.broadcast %cst_9 : f32 to vector<128x128xf32>
    %22 = arith.select %20, %15, %21 : vector<128x128xi1>, vector<128x128xf32>
    %cst_10 = arith.constant dense<0xFF800000> : vector<128xf32>
    %23 = vector.multi_reduction <maximumf>, %22, %cst_10 [1] : vector<128x128xf32> to vector<128xf32>
    %24 = vector.shape_cast %23 : vector<128xf32> to vector<128x1xf32>
    %25 = vector.broadcast %24 : vector<128x1xf32> to vector<128x128xf32>
    %26 = arith.cmpf oeq, %22, %25 : vector<128x128xf32>
    %cst_11 = arith.constant 1.280000e+02 : f32
    %27 = vector.broadcast %cst_11 : f32 to vector<128x128xf32>
    %28 = arith.select %26, %18, %27 : vector<128x128xi1>, vector<128x128xf32>
    %cst_12 = arith.constant dense<0x7F800000> : vector<128xf32>
    %29 = vector.multi_reduction <minimumf>, %28, %cst_12 [1] : vector<128x128xf32> to vector<128xf32>
    %30 = vector.shape_cast %29 : vector<128xf32> to vector<128x1xf32>
    %31 = vector.broadcast %30 : vector<128x1xf32> to vector<128x128xf32>
    %32 = arith.cmpf oeq, %18, %31 : vector<128x128xf32>
    %33 = arith.extui %32 : vector<128x128xi1> to vector<128x128xi32>
    %34 = arith.sitofp %33 : vector<128x128xi32> to vector<128x128xf32>
    %c128_i32 = arith.constant 128 : i32
    %35 = arith.muli %arg0, %c128_i32 : i32
    %36 = tpu.iota {dimensions = array<i32: 0>} : vector<128x1xi32>
    %37 = vector.broadcast %35 : i32 to vector<128x1xi32>
    %38 = arith.addi %37, %36 : vector<128x1xi32>
    %c256_i32 = arith.constant 256 : i32
    %39 = vector.broadcast %c256_i32 : i32 to vector<128x1xi32>
    %40 = arith.cmpi slt, %38, %39 : vector<128x1xi32>
    %cst_13 = arith.constant 0.000000e+00 : f32
    %41 = vector.shape_cast %40 : vector<128x1xi1> to vector<128x1xi1>
    %42 = vector.broadcast %41 : vector<128x1xi1> to vector<128x128xi1>
    %43 = vector.broadcast %cst_13 : f32 to vector<128x128xf32>
    %44 = arith.select %42, %34, %43 : vector<128x128xi1>, vector<128x128xf32>
    %45 = arith.truncf %44 : vector<128x128xf32> to vector<128x128xbf16>
    %cst_14 = arith.constant -1.000000e+00 : f32
    %46 = vector.broadcast %cst_14 : f32 to vector<128x1xf32>
    %47 = arith.select %40, %30, %46 : vector<128x1xi1>, vector<128x1xf32>
    %c0_15 = arith.constant 0 : index
    %c0_16 = arith.constant 0 : index
    %48 = vector.load %arg5[%c0_15, %c0_16] : memref<128x1xf32, #tpu.memory_space<vmem>>, vector<128x1xf32>
    tpu.vector_store %arg5[%c0_15, %c0_16], %47 {strides = array<i32>} : memref<128x1xf32, #tpu.memory_space<vmem>>, vector<128x1xf32>,
    %49 = vector.extract_strided_slice %18 {offsets = [0, 0], sizes = [1, 128], strides = [1, 1]} : vector<128x128xf32> to vector<1x128xf32>
    %cst_17 = arith.constant dense<0.000000e+00> : vector<1x128xf32>
    %50 = tpu.matmul %49, %44, %cst_17 {dimension_numbers = #tpu.dot_dimension_numbers<[1], [1], [0], [0], [0, 0, 1, 0], [], []>} : vector<1x128xf32>, vector<128x128xf32>, vector<1x128xf32> -> vector<1x128xf32>
    %c0_18 = arith.constant 0 : index
    %c0_19 = arith.constant 0 : index
    %51 = vector.load %arg6[%c0_18, %c0_19] : memref<1x128xf32, #tpu.memory_space<vmem>>, vector<1x128xf32>
    tpu.vector_store %arg6[%c0_18, %c0_19], %50 {strides = array<i32>} : memref<1x128xf32, #tpu.memory_space<vmem>>, vector<1x128xf32>,
    %cst_20 = arith.constant dense<0.000000e+00> : vector<128x256xf32>
    %52 = tpu.matmul %45, %3, %cst_20 {dimension_numbers = #tpu.dot_dimension_numbers<[1], [0], [0], [1], [0, 0, 1, 1], [], []>} : vector<128x128xbf16>, vector<128x256xbf16>, vector<128x256xf32> -> vector<128x256xf32>
    %c0_21 = arith.constant 0 : index
    %c0_22 = arith.constant 0 : index
    %53 = vector.load %arg7[%c0_21, %c0_22] : memref<128x256xf32, #tpu.memory_space<vmem>>, vector<128x256xf32>
    tpu.vector_store %arg7[%c0_21, %c0_22], %52 {strides = array<i32>} : memref<128x256xf32, #tpu.memory_space<vmem>>, vector<128x256xf32>,
    %cst_23 = arith.constant dense<0.000000e+00> : vector<128x256xf32>
    %54 = tpu.matmul %45, %2, %cst_23 {dimension_numbers = #tpu.dot_dimension_numbers<[0], [0], [1], [1], [0, 1, 1, 1], [], []>} : vector<128x128xbf16>, vector<128x256xbf16>, vector<128x256xf32> -> vector<128x256xf32>
    %cst_24 = arith.constant 1.000000e+00 : bf16
    %55 = vector.broadcast %cst_24 : bf16 to vector<128x1xbf16>
    %cst_25 = arith.constant dense<0.000000e+00> : vector<128x1xf32>
    %56 = tpu.matmul %45, %55, %cst_25 {dimension_numbers = #tpu.dot_dimension_numbers<[0], [0], [1], [1], [0, 1, 1, 1], [], []>} : vector<128x128xbf16>, vector<128x1xbf16>, vector<128x1xf32> -> vector<128x1xf32>
    %c0_i32 = arith.constant 0 : i32
    %57 = arith.cmpi eq, %arg0, %c0_i32 : i32
    %58 = arith.extui %57 : i1 to i32
    %c0_i32_26 = arith.constant 0 : i32
    %59 = arith.cmpi ne, %58, %c0_i32_26 : i32
    scf.if %59 {
      %cst_36 = arith.constant 0.000000e+00 : f32
      %69 = vector.broadcast %cst_36 : f32 to vector<128x256xf32>
      %c0_37 = arith.constant 0 : index
      %c0_38 = arith.constant 0 : index
      %70 = vector.load %arg8[%c0_37, %c0_38] : memref<128x256xf32, #tpu.memory_space<vmem>>, vector<128x256xf32>
      tpu.vector_store %arg8[%c0_37, %c0_38], %69 {strides = array<i32>} : memref<128x256xf32, #tpu.memory_space<vmem>>, vector<128x256xf32>,
      %cst_39 = arith.constant 0.000000e+00 : f32
      %71 = vector.broadcast %cst_39 : f32 to vector<128x1xf32>
      %c0_40 = arith.constant 0 : index
      %c0_41 = arith.constant 0 : index
      %72 = vector.load %arg9[%c0_40, %c0_41] : memref<128x1xf32, #tpu.memory_space<vmem>>, vector<128x1xf32>
      tpu.vector_store %arg9[%c0_40, %c0_41], %71 {strides = array<i32>} : memref<128x1xf32, #tpu.memory_space<vmem>>, vector<128x1xf32>,
    } else {
    }
    %c0_27 = arith.constant 0 : index
    %c0_28 = arith.constant 0 : index
    %60 = vector.load %arg8[%c0_27, %c0_28] : memref<128x256xf32, #tpu.memory_space<vmem>>, vector<128x256xf32>
    %61 = arith.addf %60, %54 : vector<128x256xf32>
    %c0_29 = arith.constant 0 : index
    %c0_30 = arith.constant 0 : index
    %62 = vector.load %arg8[%c0_29, %c0_30] : memref<128x256xf32, #tpu.memory_space<vmem>>, vector<128x256xf32>
    tpu.vector_store %arg8[%c0_29, %c0_30], %61 {strides = array<i32>} : memref<128x256xf32, #tpu.memory_space<vmem>>, vector<128x256xf32>,
    %c0_31 = arith.constant 0 : index
    %c0_32 = arith.constant 0 : index
    %63 = vector.load %arg9[%c0_31, %c0_32] : memref<128x1xf32, #tpu.memory_space<vmem>>, vector<128x1xf32>
    %64 = arith.addf %63, %56 : vector<128x1xf32>
    %c0_33 = arith.constant 0 : index
    %c0_34 = arith.constant 0 : index
    %65 = vector.load %arg9[%c0_33, %c0_34] : memref<128x1xf32, #tpu.memory_space<vmem>>, vector<128x1xf32>
    tpu.vector_store %arg9[%c0_33, %c0_34], %64 {strides = array<i32>} : memref<128x1xf32, #tpu.memory_space<vmem>>, vector<128x1xf32>,
    %c1_i32 = arith.constant 1 : i32
    %66 = arith.cmpi eq, %arg0, %c1_i32 : i32
    %67 = arith.extui %66 : i1 to i32
    %c0_i32_35 = arith.constant 0 : i32
    %68 = arith.cmpi ne, %67, %c0_i32_35 : i32
    scf.if %68 {
      %c0_36 = arith.constant 0 : index
      %c0_37 = arith.constant 0 : index
      %69 = vector.load %arg9[%c0_36, %c0_37] : memref<128x1xf32, #tpu.memory_space<vmem>>, vector<128x1xf32>
      %cst_38 = arith.constant 0.000000e+00 : f32
      %70 = vector.broadcast %cst_38 : f32 to vector<128x1xf32>
      %71 = arith.cmpf oeq, %69, %70 : vector<128x1xf32>
      %72 = arith.extui %71 : vector<128x1xi1> to vector<128x1xi32>
      %73 = arith.sitofp %72 : vector<128x1xi32> to vector<128x1xf32>
      %c0_39 = arith.constant 0 : index
      %c0_40 = arith.constant 0 : index
      %74 = vector.load %arg8[%c0_39, %c0_40] : memref<128x256xf32, #tpu.memory_space<vmem>>, vector<128x256xf32>
      %75 = vector.broadcast %73 : vector<128x1xf32> to vector<128x256xf32>
      %76 = arith.mulf %1, %75 : vector<128x256xf32>
      %77 = arith.addf %74, %76 : vector<128x256xf32>
      %c0_41 = arith.constant 0 : index
      %c0_42 = arith.constant 0 : index
      %78 = vector.load %arg8[%c0_41, %c0_42] : memref<128x256xf32, #tpu.memory_space<vmem>>, vector<128x256xf32>
      tpu.vector_store %arg8[%c0_41, %c0_42], %77 {strides = array<i32>} : memref<128x256xf32, #tpu.memory_space<vmem>>, vector<128x256xf32>,
    } else {
    }
    return
  }
  func.func @transform_0(%arg0: i32) -> (i32, i32) {
    %c0_i32 = arith.constant 0 : i32
    %c0_i32_0 = arith.constant 0 : i32
    return %arg0, %c0_i32 : i32, i32
  }
  func.func @transform_1(%arg0: i32) -> (i32, i32) {
    %c0_i32 = arith.constant 0 : i32
    %c0_i32_0 = arith.constant 0 : i32
    %c0_i32_1 = arith.constant 0 : i32
    return %c0_i32, %c0_i32_0 : i32, i32
  }
  func.func @transform_2(%arg0: i32) -> (i32, i32) {
    %c0_i32 = arith.constant 0 : i32
    %c0_i32_0 = arith.constant 0 : i32
    %c0_i32_1 = arith.constant 0 : i32
    return %c0_i32, %c0_i32_0 : i32, i32
  }
  func.func @transform_3(%arg0: i32) -> (i32, i32) {
    %c0_i32 = arith.constant 0 : i32
    %c0_i32_0 = arith.constant 0 : i32
    return %arg0, %c0_i32 : i32, i32
  }
  func.func @transform_4(%arg0: i32) -> (i32, i32) {
    %c0_i32 = arith.constant 0 : i32
    %c0_i32_0 = arith.constant 0 : i32
    return %arg0, %c0_i32 : i32, i32
  }
  func.func @transform_5(%arg0: i32) -> (i32, i32) {
    %c0_i32 = arith.constant 0 : i32
    %c0_i32_0 = arith.constant 0 : i32
    return %c0_i32, %arg0 : i32, i32
  }
  func.func @transform_6(%arg0: i32) -> (i32, i32) {
    %c0_i32 = arith.constant 0 : i32
    %c0_i32_0 = arith.constant 0 : i32
    return %arg0, %c0_i32 : i32, i32
  }
  func.func @transform_7(%arg0: i32) -> (i32, i32) {
    %c0_i32 = arith.constant 0 : i32
    %c0_i32_0 = arith.constant 0 : i32
    %c0_i32_1 = arith.constant 0 : i32
    return %c0_i32, %c0_i32_0 : i32, i32
  }
}

</mosaic_0001>

<bundles_post_ra>
// kernel: tpu_custom_call.1
= control target key start
LH: loop header
LB: loop body
LE: loop exit
PB: predicated region body
PF: predicated region fallthrough
CT: control target
= control target key end

     0   :  { %s4207_s0 = inlined_call_operand.hbm [shape: f32[256,256], index: 0, kind: input, shape index: {}]   ;;  %s4208_s1 = inlined_call_operand.hbm [shape: f32[128,256], index: 1, kind: input, shape index: {}]   ;;  %s4209_s2 = inlined_call_operand.vmem [shape: f32[1,128], index: 2, kind: input, shape index: {}]   ;;  %s4210_s3 = inlined_call_operand.hbm [shape: f32[256,128], index: 3, kind: output, shape index: {0}]   ;;  %s4211_s4 = inlined_call_operand.vmem [shape: f32[256,1], index: 4, kind: output, shape index: {1}]   ;;  %s4212_s5 = inlined_call_operand.hbm [shape: f32[1,256], index: 5, kind: output, shape index: {2}]   ;;  %s4213_s6 = inlined_call_operand.hbm [shape: f32[256,256], index: 6, kind: output, shape index: {3}]   ;;  %s4214_s7 = inlined_call_operand.hbm [shape: f32[128,256], index: 7, kind: output, shape index: {4}]  }
   0x1   :  { %4261 = sst [smem:[#allocation50_spill]] %s4207_s0 }
   0x2   :  { %4262 = sst [smem:[#allocation51_spill]] %s4208_s1 }
   0x3   :  { %4263 = sst [smem:[#allocation52_spill]] %s4209_s2 }
   0x4   :  { %4264 = sst [smem:[#allocation53_spill]] %s4211_s4 }
   0x5   :  { %13 = vsyncpa [#allocation4], 0 }
   0x6   :  { %15 = vsyncpa [#allocation4 + $0x1], 0 }
   0x7   :  { %16 = vsyncpa [#allocation7], 0 }
   0x8   :  { %17 = vsyncpa [#allocation5], 0 }
   0x9   :  { %19 = vsyncpa [#allocation5 + $0x1], 0 }
   0xa   :  { %20 = vsyncpa [#allocation10], 0 }
   0xb   :  { %22 = vsyncpa [#allocation10 + $0x1], 0 }
   0xc   :  { %23 = vsyncpa [#allocation13], 0  ;;  %s2782_s24 = smov 0   ;;  %s2784_s25 = smov 0  }
   0xd   :  { %s2786_s26 = smov 0   ;;  %s2788_s27 = smov 0  }
   0xe LB: > { %s2803_s28 = sadd.s32 4294967295, %s2727_s27   ;;  %s4215_s29 = sadd.s32 4294967294, %s2727_s27   ;;  %s2727_s27 = sphi %s2788_s27, %s4382_s27   ;;  %s2723_s26 = sphi %s2786_s26, %s4381_s26   ;;  %s2719_s25 = sphi %s2784_s25, %s4380_s25   ;;  %s2715_s24 = sphi %s2782_s24, %s4379_s24  }
   0xf   : > { %p49_p0 = scmp.ne.s32.totalorder %s2719_s25, %s2715_s24  ;;  %p50_p1 = scmp.eq.s32.totalorder %s2803_s28, 0 }
  0x10   : > { %p4218_p2 = scmp.eq.s32.totalorder %s2803_s28, 1  ;;  %p121_p3 = scmp.eq.s32.totalorder %s4215_s29, 1 }
  0x11   : > { %p2814_p4 = por %p50_p1, %p49_p0  ;;  %p2199_p5 = scmp.ge.s32.totalorder %s2727_s27, 1 }
  0x12   : > { %p2819_p6 = por %p121_p3, %p49_p0  ;;  %p227_p7 = scmp.lt.s32.totalorder %s2727_s27, 3 }
  0x13   : > { %s4267_s1 = sld [smem:[#allocation51_spill]]  ;;  %s2729_s13 = smov [#allocation6]  }
  0x14   : > { %p2828_p9 = pnand %p2199_p5, %p227_p7  ;;  %s240_s14 = sshll.u32 %s2729_s13, 4  ;;  %s241_s14 = int_to_ptr.vmem [resolvable:$true] %s240_s14 }
  0x15   : > { %s2838_s15 = sadd.s32 1, %s2727_s27   ;;  %s4216_s16 = smov 256  }
  0x16   : > { %p2360_p10 = pneg %p2828_p9  ;;  %s4217_s17 = smov 16  }
  0x17   : > { %s33_s18 = ssub.s32 %s2727_s27, %s2838_s15  ;;  %s36_s19 = sadd.s32 1, %s2723_s26 }
  0x18   : > { %p2361_p11 = pnand %p2360_p10, %p50_p1  ;;  %p34_p13 = scmp.eq.s32.totalorder %s33_s18, 0 }
  0x19   : > { %s238_s11 = sshll.u32 %s4267_s1, 4  ;;  %p43_p0 = scmp.ne.s32.totalorder %s2723_s26, %s2719_s25  ;;  %s239_s11 = int_to_ptr.hbm [resolvable:$true] %s238_s11 }
  0x1a   : > { %2363 = dma.hbm_to_vmem [thread:$0]  (!%p2361_p11), %s239_s11, 4096, %s241_s14, [#allocation7], %s4216_s16, %s4216_s16, %s4217_s17  }
  0x1b   : > { %p44_p3 = scmp.eq.s32.totalorder %s2727_s27, 0  ;;  %p2854_p5 = por %p4218_p2, %p43_p0 }
  0x1c   : > { %s2850_s20 = scalar_select %p34_p13, %s2723_s26, %s36_s19  }
  0x1d   : > { %p2379_p7 = scmp.lt.s32.totalorder %s2727_s27, 2  ;;  %s257_s22 = sand.u32 1, %s2723_s26  }
  0x1e   : > { %s2324_s23 = sshll.u32 %s2727_s27, 8  ;;  %p45_p10 = por %p44_p3, %p43_p0 }
  0x1f   : > { %s2202_s9 = sshll.u32 %s257_s22, 8  ;;  %s4270_s0 = sld [smem:[#allocation50_spill]] }
  0x20   : > { %s261_s18 = scalar_lea.vmem [#allocation3], %s2202_s9  ;;  %p2864_p11 = pnand %p2379_p7, %p45_p10 }
  0x21   : > { %s270_s29 = sshll.u32 %s261_s18, 4  ;;  %s258_s16 = scalar_lea.sflag [#allocation4], %s257_s22  ;;  %s271_s29 = int_to_ptr.vmem [resolvable:$true] %s270_s29 }
  0x22   : > { %p2539_p0 = pneg %p2864_p11 }
  0x25   : > { %s267_s11 = scalar_lea.hbm %s4270_s0, %s2324_s23  ;;  %s2542_s9 = scalar_lea.hbm %s4270_s0, 512 }
  0x26   : > { %s268_s14 = sshll.u32 %s267_s11, 4  ;;  %s269_s14 = int_to_ptr.hbm [resolvable:$true] %s268_s14 }
  0x27   : > { %s2535_s17 = sshra.s32 %s269_s14, 4  ;;  %s2536_s17 = int_to_ptr.hbm [resolvable:$true] %s2535_s17 }
  0x28   : > { %s2537_s1 = scalar_lea.hbm %s2536_s17, 256  ;;  %p2543_p7 = scmp.lt.s32.totalorder %s2536_s17, %s4270_s0 }
  0x29   : > { %p2538_p13 = scmp.ne.s32.totalorder %s2536_s17, %s2537_s1  ;;  %p2544_p10 = scmp.lt.s32.totalorder %s2542_s9, %s2537_s1 }
  0x2b   : > { %p2540_p3 = pnand %p2539_p0, %p2538_p13  ;;  %p2545_p2 = por %p2544_p10, %p2543_p7 }
  0x2d   : > { %p2541_p12 = pneg %p2540_p3 }
  0x2f   : > { %p2546_p8 = pnand %p2545_p2, %p2541_p12 }
  0x31   : > { %2549 = shalt.err (!%p2546_p8)
}
  0x32   : > { %s4272_s22 = smov 16   ;;  %s4273_s18 = smov 256  }
  0x33   : > { %2367 = dma.hbm_to_vmem [thread:$0]  (!%p2864_p11), %s269_s14, 4096, %s271_s29, %s258_s16, %s4273_s18, %s4273_s18, %s4272_s22  }
  0x34   : > { %282 = sbr.rel (%p2828_p9) target bundleno = 1389 (0x56d), region = 32 }
  0x39   : > { %s2884_s23 = sand.u32 1, %s2719_s25  }
  0x3a   : > { %s2207_s1 = sshll.u32 %s2884_s23, 8  ;;  %s285_s17 = scalar_lea.sflag [#allocation4], %s2884_s23 }
  0x3b   : > { %s2890_s10 = scalar_lea.vmem [#allocation3], %s2207_s1 }
  0x3c   : > { %2694 = dma.done.wait (%p2814_p4), %s285_s17, 4096  }
  0x3d   : > { %2696 = vsyncadd (%p2814_p4), %s285_s17, 4294963200 }
  0x3e   : > { %2698 = dma.done.wait (%p50_p1), [#allocation7], 4096  }
  0x3f   : > { %2700 = vsyncadd (%p50_p1), [#allocation7], 4294963200  ;;  %v2900_v0 = vld [vmem:[#allocation6 + $0xe0] sm:$0xff]  ;;  %v2902_v1 = vld [vmem:[#allocation6 + $0xf0] sm:$0xff]  ;;  %s4305_s2 = sld [smem:[#allocation52_spill]]  ;;  %s2209_s12 = sshll.u32 %s2884_s23, 7 }
  0x40   : > { %4274 = vst [vmem:[#allocation19_spill] sm:$0xff] %v2900_v0  ;;  %v2904_v2 = vld [vmem:[#allocation6 + $0xe8] sm:$0xff]  ;;  %v443_v3 = vpack.c.bf16 %v2902_v1, %v2900_v0  ;;  %v2908_v4 = vld [vmem:[#allocation6 + $0xf8] sm:$0xff]  ;;  %v2914_v6 = vld [vmem:[#allocation6 + $0xc0] sm:$0xff]  ;;  %s3264_s16 = scalar_lea.vmem [#allocation8], %s2209_s12  ;;  %s2211_s14 = sshll.u32 %s2803_s28, 4 }
  0x41   : > { %4275 = vst [vmem:[#allocation20_spill] sm:$0xff] %v2902_v1  ;;  %v2912_v5 = vpack.c.bf16 %v2908_v4, %v2904_v2  ;;  %v2916_v7 = vld [vmem:[#allocation6 + $0xd0] sm:$0xff]  ;;  %v2921_v9 = vld [vmem:[#allocation6 + $0xc8] sm:$0xff]  ;;  %v2923_v10 = vld [vmem:[#allocation6 + $0xd8] sm:$0xff]  ;;  %p342_p1 = scmp.lt.s32.totalorder %s2211_s14, 31  ;;  %s4260_s19 = sshll.u32 %s2803_s28, 7 }
  0x42   : > { %4276 = vst [vmem:[#allocation21_spill] sm:$0xff] %v2904_v2  ;;  %445 = vmatpush.bf16.xpose.msra.mxu0 %v443_v3  ;;  %1176 = vmatpush.bf16.msra.mxu3 %v443_v3  ;;  %v441_v8 = vpack.c.bf16 %v2916_v7, %v2914_v6  ;;  %v2925_v11 = vld [vmem:[#allocation6 + $0xa0] sm:$0xff]  ;;  %v2927_v12 = vld [vmem:[#allocation6 + $0xb0] sm:$0xff]  ;;  %v2931_v13 = vpack.c.bf16 %v2923_v10, %v2921_v9  ;;  %v2940_v17 = vld [vmem:[#allocation6 + $0xa8] sm:$0xff]  ;;  %s4311_s4 = sld [smem:[#allocation53_spill]]  ;;  %s3866_s18 = scalar_lea.vmem [#allocation11], %s2207_s1 }
  0x43   : > { %4277 = vst [vmem:[#allocation22_spill] sm:$0xff] %v2908_v4  ;;  %494 = vmatpush.bf16.xpose.msra.mxu1 %v2912_v5  ;;  %v439_v14 = vpack.c.bf16 %v2927_v12, %v2925_v11  ;;  %v2935_v15 = vld [vmem:[#allocation6 + $0x80] sm:$0xff]  ;;  %v2937_v16 = vld [vmem:[#allocation6 + $0x90] sm:$0xff]  ;;  %v2942_v18 = vld [vmem:[#allocation6 + $0xb8] sm:$0xff]  ;;  %s4384_s14 = smov (!%p342_p1, %s2211_s14), 31  ;;  %s329_s1 = scalar_lea.vmem [#allocation9], %s2884_s23 }
  0x44   : > { %4278 = vst [vmem:[#allocation23_spill] sm:$0xff] %v2914_v6  ;;  %v437_v19 = vpack.c.bf16 %v2937_v16, %v2935_v15  ;;  %v2946_v20 = vld [vmem:[#allocation6 + $0x60] sm:$0xff]  ;;  %v2948_v21 = vld [vmem:[#allocation6 + $0x70] sm:$0xff]  ;;  %v2952_v22 = vpack.c.bf16 %v2942_v18, %v2940_v17  ;;  %v2960_v26 = vld [vmem:[#allocation6 + $0x88] sm:$0xff]  ;;  %s2212_s9 = sshll.u32 %s4384_s14, 3  ;;  %p4341_p2 = scmp.ne.s32.totalorder %s2803_s28, 0 }
  0x45   : > { %4279 = vst [vmem:[#allocation24_spill] sm:$0xff] %v2916_v7  ;;  %v435_v23 = vpack.c.bf16 %v2948_v21, %v2946_v20  ;;  %v2956_v24 = vld [vmem:[#allocation6 + $0x40] sm:$0xff]  ;;  %v2958_v25 = vld [vmem:[#allocation6 + $0x50] sm:$0xff]  ;;  %v2962_v27 = vld [vmem:[#allocation6 + $0x98] sm:$0xff] }
  0x46   : > { %4280 = vst [vmem:[#allocation25_spill] sm:$0xff] %v2921_v9  ;;  %1177 = vmatpush.bf16.msra.mxu3 %v441_v8  ;;  %v2966_v28 = vld [vmem:[%s2890_s10 + $0xf0] sm:$0xff]  ;;  %v2969_v29 = vld [vmem:[%s2890_s10 + $0xf8] sm:$0xff]  ;;  %v2976_v31 = vpack.c.bf16 %v2958_v25, %v2956_v24  ;;  %v2988_v36 = vld [vmem:[%s2890_s10] sm:$0xff]  ;;  %v3006_v44 = vpack.c.bf16 %v2962_v27, %v2960_v26 }
  0x47   : > { %4281 = vst [vmem:[#allocation26_spill] sm:$0xff] %v2923_v10  ;;  %v2972_v30 = vld [vmem:[%s2890_s10 + $0xd0] sm:$0xff]  ;;  %v573_v32 = vmul.f32 %v2966_v28, %v2966_v28  ;;  %v574_v33 = vmul.f32 %v2969_v29, %v2969_v29  ;;  %v2983_v34 = vld [vmem:[%s2890_s10 + $0xd8] sm:$0xff]  ;;  %v2991_v37 = vld [vmem:[%s2890_s10 + $0x8] sm:$0xff]  ;;  %v543_v41 = vmul.f32 %v2988_v36, %v2988_v36 }
  0x48   : > { %4282 = vst [vmem:[#allocation27_spill] sm:$0xff] %v2925_v11  ;;  %v569_v35 = vmul.f32 %v2972_v30, %v2972_v30  ;;  %v2993_v38 = vld [vmem:[#allocation6 + $0x20] sm:$0xff]  ;;  %v2995_v39 = vld [vmem:[#allocation6 + $0x30] sm:$0xff]  ;;  %v570_v40 = vmul.f32 %v2983_v34, %v2983_v34  ;;  %v544_v42 = vmul.f32 %v2991_v37, %v2991_v37  ;;  %v3016_v50 = vld [vmem:[#allocation6 + $0x68] sm:$0xff]  ;;  %s3466_s22 = scalar_lea.vmem %s4311_s4, %s2212_s9 }
  0x49   : > { %4283 = vst [vmem:[#allocation28_spill] sm:$0xff] %v2927_v12  ;;  %v620_v43 = vadd.f32 %v574_v33, %v573_v32  ;;  %v3010_v47 = vpack.c.bf16 %v2995_v39, %v2993_v38  ;;  %v3012_v48 = vld [vmem:[#allocation6] sm:$0xff]  ;;  %v3014_v49 = vld [vmem:[#allocation6 + $0x10] sm:$0xff]  ;;  %v3018_v51 = vld [vmem:[#allocation6 + $0x78] sm:$0xff] }
  0x4a   : > { %4284 = vst [vmem:[#allocation29_spill] sm:$0xff] %v2935_v15  ;;  %446 = vmatpush.bf16.xpose.msra.mxu0 %v441_v8  ;;  %1178 = vmatpush.bf16.msra.mxu3 %v439_v14  ;;  %v614_v45 = vadd.f32 %v570_v40, %v569_v35  ;;  %v575_v46 = vadd.f32 %v544_v42, %v543_v41  ;;  %v3023_v52 = vld [vmem:[%s2890_s10 + $0xe0] sm:$0xff]  ;;  %v3026_v53 = vld [vmem:[%s2890_s10 + $0xe8] sm:$0xff]  ;;  %v3045_v60 = vld [vmem:[%s2890_s10 + $0x10] sm:$0xff] }
  0x4b   : > { %495 = vmatpush.bf16.xpose.msra.mxu1 %v2931_v13  ;;  %4285 = vst [vmem:[#allocation30_spill] sm:$0xff] %v2940_v17  ;;  %621 = vadd.xlane.f32.xlu0 %v620_v43  ;;  %v3029_v54 = vld [vmem:[%s2890_s10 + $0xc0] sm:$0xff]  ;;  %v3033_v55 = vpack.c.bf16 %v3014_v49, %v3012_v48  ;;  %v571_v56 = vmul.f32 %v3023_v52, %v3023_v52  ;;  %v3040_v58 = vld [vmem:[%s2890_s10 + $0xc8] sm:$0xff]  ;;  %v3048_v61 = vld [vmem:[%s2890_s10 + $0x18] sm:$0xff] }
  0x4c   : > { %4286 = vst [vmem:[#allocation31_spill] sm:$0xff] %v2942_v18  ;;  %615 = vadd.xlane.f32.xlu2 %v614_v45  ;;  %576 = vadd.xlane.f32.xlu1 %v575_v46  ;;  %v572_v57 = vmul.f32 %v3026_v53, %v3026_v53  ;;  %v567_v59 = vmul.f32 %v3029_v54, %v3029_v54  ;;  %v3062_v33 = vld [vmem:[%s2890_s10 + $0xb0] sm:$0xff]  ;;  %v3065_v35 = vld [vmem:[%s2890_s10 + $0xb8] sm:$0xff]  ;;  %v3068_v40 = vld [vmem:[%s2890_s10 + $0x20] sm:$0xff] }
  0x4d   : > { %4287 = vst [vmem:[#allocation32_spill] sm:$0xff] %v2946_v20  ;;  %v568_v62 = vmul.f32 %v3040_v58, %v3040_v58  ;;  %v545_v63 = vmul.f32 %v3045_v60, %v3045_v60  ;;  %v546_v3 = vmul.f32 %v3048_v61, %v3048_v61  ;;  %v565_v41 = vmul.f32 %v3062_v33, %v3062_v33  ;;  %v3076_v43 = vld [vmem:[%s2890_s10 + $0x28] sm:$0xff]  ;;  %v3082_v46 = vld [vmem:[#allocation6 + $0x58] sm:$0xff]  ;;  %v357_v7 = vld [vmem:[%s2890_s10 + $0x40] sm:$0xff] }
  0x4e   : > { %4288 = vst [vmem:[#allocation33_spill] sm:$0xff] %v2948_v21  ;;  %1179 = vmatpush.bf16.msra.mxu3 %v437_v19  ;;  %v617_v8 = vadd.f32 %v572_v57, %v571_v56  ;;  %v566_v42 = vmul.f32 %v3065_v35, %v3065_v35  ;;  %v3080_v45 = vld [vmem:[#allocation6 + $0x48] sm:$0xff]  ;;  %v548_v56 = vmul.f32 %v3076_v43, %v3076_v43  ;;  %v364_v10 = vld [vmem:[%s2890_s10 + $0x78] sm:$0xff] }
  0x4f   : > { %4289 = vst [vmem:[#allocation34_spill] sm:$0xff] %v2956_v24  ;;  %v578_v32 = vadd.f32 %v546_v3, %v545_v63  ;;  %v3093_v3 = vld [vmem:[%s2890_s10 + $0x80] sm:$0xff]  ;;  %v370_v0 = vld [vmem:[%s2890_s10 + $0xa8] sm:$0xff] }
  0x50   : > { %4290 = vst [vmem:[#allocation35_spill] sm:$0xff] %v2958_v25  ;;  %v608_v57 = vadd.f32 %v566_v42, %v565_v41  ;;  %v559_v42 = vmul.f32 %v3093_v3, %v3093_v3  ;;  %v3128_v4 = vld [vmem:[#allocation6 + $0x8] sm:$0xff]  ;;  %v564_v1 = vmul.f32 %v370_v0, %v370_v0 }
  0x51   : > { %4291 = vst [vmem:[#allocation36_spill] sm:$0xff] %v2960_v26 }
  0x52   : > { %447 = vmatpush.bf16.xpose.msra.mxu0 %v439_v14  ;;  %4292 = vst [vmem:[#allocation37_spill] sm:$0xff] %v2962_v27  ;;  %1180 = vmatpush.bf16.msra.mxu3 %v435_v23  ;;  %v3059_v14 = vpack.c.bf16 %v3018_v51, %v3016_v50 }
  0x53   : > { %496 = vmatpush.bf16.xpose.msra.mxu1 %v2952_v22  ;;  %4293 = vst [vmem:[#allocation38_spill] sm:$0xff] %v2993_v38  ;;  %618 = vadd.xlane.f32.xlu0 %v617_v8  ;;  %v3096_v8 = vld [vmem:[%s2890_s10 + $0x88] sm:$0xff] }
  0x54   : > { %4294 = vst [vmem:[#allocation39_spill] sm:$0xff] %v2995_v39  ;;  %579 = vadd.xlane.f32.xlu1 %v578_v32  ;;  %v367_v39 = vld [vmem:[%s2890_s10 + $0x90] sm:$0xff] }
  0x55   : > { %4295 = vst [vmem:[#allocation40_spill] sm:$0xff] %v3012_v48 }
  0x56   : > { %1181 = vmatpush.bf16.msra.mxu3 %v2976_v31  ;;  %4296 = vst [vmem:[#allocation41_spill] sm:$0xff] %v3014_v49 }
  0x57   : > { %4297 = vst [vmem:[#allocation42_spill] sm:$0xff] %v3016_v50  ;;  %v368_v50 = vld [vmem:[%s2890_s10 + $0x98] sm:$0xff] }
  0x58   : > { %4298 = vst [vmem:[#allocation43_spill] sm:$0xff] %v3018_v51  ;;  %v562_v24 = vmul.f32 %v368_v50, %v368_v50 }
  0x59   : > { %4299 = vst [vmem:[#allocation44_spill] sm:$0xff] %v3080_v45 }
  0x5a   : > { %448 = vmatpush.bf16.xpose.msra.mxu0 %v437_v19  ;;  %1182 = vmatpush.bf16.msra.mxu3 %v3010_v47  ;;  %v611_v19 = vadd.f32 %v568_v62, %v567_v59  ;;  %4300 = vst [vmem:[#allocation45_spill] sm:$0xff] %v3082_v46  ;;  %v3087_v59 = vld [vmem:[%s2890_s10 + $0x30] sm:$0xff]  ;;  %v3090_v62 = vld [vmem:[%s2890_s10 + $0x38] sm:$0xff] }
  0x5b   : > { %497 = vmatpush.bf16.xpose.msra.mxu1 %v3006_v44  ;;  %609 = vadd.xlane.f32.xlu0 %v608_v57  ;;  %v549_v32 = vmul.f32 %v3087_v59, %v3087_v59  ;;  %v550_v41 = vmul.f32 %v3090_v62, %v3090_v62  ;;  %v3114_v57 = vld [vmem:[#allocation6 + $0x38] sm:$0xff]  ;;  %4303 = vst [vmem:[#allocation48_spill] sm:$0xff] %v3128_v4 }
  0x5c   : > { %612 = vadd.xlane.f32.xlu2 %v611_v19  ;;  %v3100_v19 = vpack.c.bf16 %v3082_v46, %v3080_v45  ;;  %4302 = vst [vmem:[#allocation47_spill] sm:$0xff] %v3114_v57  ;;  %v561_v45 = vmul.f32 %v367_v39, %v367_v39  ;;  %v4314_v46 = vmov 0.0  }
  0x5d   : > { %v584_v9 = vadd.f32 %v550_v41, %v549_v32  ;;  %v558_v32 = vmul.f32 %v364_v10, %v364_v10  ;;  %v358_v41 = vld [vmem:[%s2890_s10 + $0x48] sm:$0xff] }
  0x5e   : > { %1183 = vmatpush.bf16.msra.mxu3 %v3033_v55 }
  0x62   : > { %449 = vmatpush.bf16.xpose.msra.mxu0 %v435_v23  ;;  %v547_v23 = vmul.f32 %v3068_v40, %v3068_v40 }
  0x63   : > { %498 = vmatpush.bf16.xpose.msra.mxu1 %v3059_v14  ;;  %585 = vadd.xlane.f32.xlu0 %v584_v9  ;;  %v552_v9 = vmul.f32 %v358_v41, %v358_v41 }
  0x64   : > { %v581_v63 = vadd.f32 %v548_v56, %v547_v23  ;;  %v560_v23 = vmul.f32 %v3096_v8, %v3096_v8  ;;  %v3112_v56 = vld [vmem:[#allocation6 + $0x28] sm:$0xff] }
  0x65   : > { %4301 = vst [vmem:[#allocation46_spill] sm:$0xff] %v3112_v56 }
  0x66   : > { %582 = vadd.xlane.f32.xlu2 %v581_v63  ;;  %v599_v6 = vadd.f32 %v560_v23, %v559_v42  ;;  %v3118_v63 = vpack.c.bf16 %v3114_v57, %v3112_v56  ;;  %v551_v42 = vmul.f32 %v357_v7, %v357_v7  ;;  %v369_v23 = vld [vmem:[%s2890_s10 + $0xa0] sm:$0xff]  ;;  %v359_v56 = vld [vmem:[%s2890_s10 + $0x50] sm:$0xff]  ;;  %v360_v57 = vld [vmem:[%s2890_s10 + $0x58] sm:$0xff] }
  0x67   : > { %v553_v48 = vmul.f32 %v359_v56, %v359_v56  ;;  %v554_v49 = vmul.f32 %v360_v57, %v360_v57 }
  0x68   : > { %v587_v20 = vadd.f32 %v552_v9, %v551_v42  ;;  %v3146_v42 = vpack.c.bf16 %v3048_v61, %v2991_v37  ;;  %v421_v37 = vpack.c.bf16 %v367_v39, %v3093_v3  ;;  %v423_v61 = vpack.c.bf16 %v3062_v33, %v369_v23 }
  0x69   : > { %v425_v39 = vpack.c.bf16 %v2972_v30, %v3029_v54 }
  0x6a   : > { %450 = vmatpush.bf16.xpose.msra.mxu0 %v2976_v31  ;;  %v363_v31 = vld [vmem:[%s2890_s10 + $0x70] sm:$0xff] }
  0x6b   : > { %499 = vmatpush.bf16.xpose.msra.mxu1 %v3100_v19  ;;  %v557_v2 = vmul.f32 %v363_v31, %v363_v31 }
  0x6d   : > { %v596_v38 = vadd.f32 %v558_v32, %v557_v2  ;;  %v590_v2 = vadd.f32 %v554_v49, %v553_v48  ;;  %v602_v32 = vadd.f32 %v562_v24, %v561_v45  ;;  %v415_v24 = vpack.c.bf16 %v3087_v59, %v3068_v40 }
  0x6e   : > { %600 = vadd.xlane.f32.xlu2 %v599_v6  ;;  %v3130_v6 = vld [vmem:[#allocation6 + $0x18] sm:$0xff]  ;;  %v417_v48 = vpack.c.bf16 %v359_v56, %v357_v7  ;;  %v3159_v49 = vpack.c.bf16 %v360_v57, %v358_v41  ;;  %v427_v7 = vpack.c.bf16 %v2966_v28, %v3023_v52  ;;  %v3189_v28 = vpack.c.bf16 %v2983_v34, %v3040_v58 }
  0x6f   : > { %4304 = vst [vmem:[#allocation49_spill] sm:$0xff] %v3130_v6  ;;  %v3138_v21 = vpack.c.bf16 %v3130_v6, %v3128_v4  ;;  %597 = vadd.xlane.f32.xlu0 %v596_v38  ;;  %v361_v38 = vld [vmem:[%s2890_s10 + $0x60] sm:$0xff] }
  0x70   : > { %v419_v40 = vpack.c.bf16 %v363_v31, %v361_v38  ;;  %1322 = vmatpush.bf16.msrb.mxu3 %v427_v7 }
  0x72   : > { %451 = vmatpush.bf16.xpose.msra.mxu0 %v3010_v47  ;;  %v563_v47 = vmul.f32 %v369_v23, %v369_v23 }
  0x73   : > { %500 = vmatpush.bf16.xpose.msra.mxu1 %v3118_v63 }
  0x74   : > { %v605_v51 = vadd.f32 %v564_v1, %v563_v47  ;;  %v413_v1 = vpack.c.bf16 %v3045_v60, %v2988_v36  ;;  %v3155_v36 = vpack.c.bf16 %v3090_v62, %v3076_v43  ;;  %v3162_v60 = vpack.c.bf16 %v368_v50, %v3096_v8  ;;  %1323 = vmatpush.bf16.msrb.mxu3 %v425_v39 }
  0x75   : > { %v3183_v43 = vpack.c.bf16 %v2969_v29, %v3026_v53 }
  0x76   : > { %606 = vadd.xlane.f32.xlu1 %v605_v51  ;;  %588 = vadd.xlane.f32.xlu2 %v587_v20  ;;  %v362_v20 = vld [vmem:[%s2890_s10 + $0x68] sm:$0xff]  ;;  %v555_v51 = vmul.f32 %v361_v38, %v361_v38  ;;  %v3221_v38 = vld [vmem:[%s4305_s2] ss:$0 sm:$0xff] }
  0x77   : > { %591 = vadd.xlane.f32.xlu0 %v590_v2  ;;  %v3166_v45 = vpack.c.bf16 %v364_v10, %v362_v20  ;;  %v3177_v10 = vpack.c.bf16 %v3065_v35, %v370_v0 }
  0x78   : > { %1324 = vmatpush.bf16.msrb.mxu3 %v423_v61 }
  0x7a   : > { %452 = vmatpush.bf16.xpose.msra.mxu0 %v3033_v55  ;;  %v556_v55 = vmul.f32 %v362_v20, %v362_v20 }
  0x7b   : > { %501 = vmatpush.bf16.xpose.msra.mxu1 %v3138_v21 }
  0x7c   : > { %v593_v9 = vadd.f32 %v556_v55, %v555_v51  ;;  %1325 = vmatpush.bf16.msrb.mxu3 %v421_v37 }
  0x7e   : > { %603 = vadd.xlane.f32.xlu1 %v602_v32 }
  0x80   : > { %1326 = vmatpush.bf16.msrb.mxu3 %v419_v40 }
  0x81   : > { %453 = vmatmul.bf16.vlgmr.msra.gmra.mxu0 %v413_v1 }
  0x82   : > { %502 = vmatmul.bf16.vlgmr.msra.gmra.mxu1 %v3146_v42  ;;  %1371 = vmatpush.bf16.msrb.mxu0 %v3183_v43 }
  0x84   : > { %1327 = vmatpush.bf16.msrb.mxu3 %v417_v48 }
  0x86   : > { %594 = vadd.xlane.f32.xlu1 %v593_v9  ;;  %1372 = vmatpush.bf16.msrb.mxu0 %v3189_v28 }
  0x88   : > { %1328 = vmatpush.bf16.msrb.mxu3 %v415_v24 }
  0x8a   : > { %1373 = vmatpush.bf16.msrb.mxu0 %v3177_v10 }
  0x8c   : > { %1329 = vmatpush.bf16.msrb.mxu3 %v413_v1 }
  0x8e   : > { %1374 = vmatpush.bf16.msrb.mxu0 %v3162_v60 }
  0x91   : > { %458 = vmatmul.bf16.gmra.mxu0 %v415_v24 }
  0x92   : > { %507 = vmatmul.bf16.gmra.mxu1 %v3155_v36  ;;  %1375 = vmatpush.bf16.msrb.mxu0 %v3166_v45 }
  0x96   : > { %1376 = vmatpush.bf16.msrb.mxu0 %v3159_v49 }
  0x9a   : > { %1377 = vmatpush.bf16.msrb.mxu0 %v3155_v36 }
  0x9e   : > { %1378 = vmatpush.bf16.msrb.mxu0 %v3146_v42 }
  0xa1   : > { %463 = vmatmul.bf16.gmra.mxu0 %v417_v48 }
  0xa2   : > { %512 = vmatmul.bf16.gmra.mxu1 %v3159_v49 }
  0xb1   : > { %468 = vmatmul.bf16.gmra.mxu0 %v419_v40 }
  0xb2   : > { %517 = vmatmul.bf16.gmra.mxu1 %v3166_v45 }
  0xbe   : > { %v3174_v50 = vpop.xlane.xlu0 %621 }
  0xbf   : > { %v3179_v33 = vpop.xlane.xlu2 %615  ;;  %v577_v30 = vpop.xlane.xlu1 %576 }
  0xc0   : > { %2430 = vrsqrt.f32 %v577_v30  ;;  %vm629_vm0 = vweird.f32 %v577_v30 }
  0xc1   : > { %473 = vmatmul.bf16.gmra.mxu0 %v421_v37  ;;  %v4239_v37 = vlaneseq }
  0xc2   : > { %522 = vmatmul.bf16.gmra.mxu1 %v3162_v60 }
  0xc6   : > { %v3192_v0 = vpop.xlane.xlu0 %618  ;;  %v2431_v53 = vpop.eup %2430 }
  0xc7   : > { %v580_v29 = vpop.xlane.xlu1 %579  ;;  %v624_v54 = vmul.f32 %v2431_v53, %v577_v30  ;;  %vm630_vm1 = vweird.f32 %v2431_v53  ;;  %v3237_v30 = vand.u32 127, %v4239_v37 }
  0xc8   : > { %2432 = vrsqrt.f32 %v580_v29  ;;  %vm631_vm2 = vmor %vm629_vm0, %vm630_vm1  ;;  %vm639_vm3 = vweird.f32 %v580_v29 }
  0xc9   : > { %v625_v35 = vmul.f32 %v2431_v53, %v624_v54  ;;  %vm854_vm8 = vcmp.lt.s32.totalorder %v3237_v30, 8 }
  0xcb   : > { %v626_v62 = vmul.f32 0.5, %v625_v35 }
  0xcd   : > { %v627_v57 = vsub.f32 1.5, %v626_v62 }
  0xce   : > { %v3198_v34 = vpop.xlane.xlu0 %609  ;;  %v2433_v59 = vpop.eup %2432 }
  0xcf   : > { %v3194_v52 = vpop.xlane.xlu2 %612  ;;  %v634_v3 = vmul.f32 %v2433_v59, %v580_v29  ;;  %v628_v23 = vmul.f32 %v2431_v53, %v627_v57  ;;  %vm640_vm4 = vweird.f32 %v2433_v59 }
  0xd0   : > { %vm3232_vm5 = vmor %vm639_vm3, %vm640_vm4 }
  0xd1   : > { %478 = vmatmul.bf16.gmra.mxu0 %v423_v61  ;;  %v635_v31 = vmul.f32 %v2433_v59, %v634_v3  ;;  %v632_v55 = vsel %vm631_vm2, %v2431_v53, %v628_v23 }
  0xd2   : > { %527 = vmatmul.bf16.gmra.mxu1 %v3177_v10  ;;  %v787_v48 = vmul.f32 %v3221_v38, %v632_v55 }
  0xd3   : > { %v636_v47 = vmul.f32 0.5, %v635_v31 }
  0xd4   : > { %v803_v54 = vmin.f32 %v787_v48, 1e+08 }
  0xd5   : > { %v637_v20 = vsub.f32 1.5, %v636_v47 }
  0xd6   : > { %v3204_v8 = vpop.xlane.xlu0 %585 }
  0xd7   : > { %v638_v61 = vmul.f32 %v2433_v59, %v637_v20  ;;  %vm659_vm10 = vweird.f32 %v3204_v8 }
  0xd9   : > { %v583_v58 = vpop.xlane.xlu2 %582  ;;  %v642_v31 = vsel %vm3232_vm5, %v2433_v59, %v638_v61 }
  0xda   : > { %2434 = vrsqrt.f32 %v583_v58  ;;  %vm649_vm6 = vweird.f32 %v583_v58  ;;  %v788_v20 = vmul.f32 %v3221_v38, %v642_v31 }
  0xdb   : > { %2436 = vrsqrt.f32 %v3204_v8 }
  0xe0   : > { %v3209_v41 = vpop.eup %2434 }
  0xe1   : > { %483 = vmatmul.bf16.gmra.mxu0 %v425_v39  ;;  %v3206_v56 = vpop.xlane.xlu2 %600  ;;  %v644_v2 = vmul.f32 %v3209_v41, %v583_v58  ;;  %v3226_v24 = vpop.eup %2436  ;;  %vm650_vm7 = vweird.f32 %v3209_v41 }
  0xe2   : > { %532 = vmatmul.bf16.gmra.mxu1 %v3189_v28  ;;  %v3216_v1 = vpop.xlane.xlu0 %597  ;;  %vm3256_vm9 = vmor %vm649_vm6, %vm650_vm7  ;;  %vm660_vm11 = vweird.f32 %v3226_v24 }
  0xe3   : > { %v645_v51 = vmul.f32 %v3209_v41, %v644_v2  ;;  %vm661_vm12 = vmor %vm659_vm10, %vm660_vm11  ;;  %vm699_vm6 = vweird.f32 %v3216_v1  ;;  %vm709_vm10 = vweird.f32 %v3206_v56 }
  0xe5   : > { %v646_v40 = vmul.f32 0.5, %v645_v51 }
  0xe7   : > { %v647_v35 = vsub.f32 1.5, %v646_v40  ;;  %v804_v40 = vmin.f32 %v788_v20, 1e+08 }
  0xe9   : > { %v3214_v32 = vpop.xlane.xlu1 %606  ;;  %v3224_v9 = vpop.xlane.xlu2 %588  ;;  %v648_v51 = vmul.f32 %v3209_v41, %v647_v35 }
  0xea   : > { %2438 = vrsqrt.f32 %v3224_v9  ;;  %v3243_v57 = vpop.xlane.xlu0 %591  ;;  %vm669_vm13 = vweird.f32 %v3224_v9 }
  0xeb   : > { %2440 = vrsqrt.f32 %v3243_v57  ;;  %v652_v35 = vsel %vm3256_vm9, %v3209_v41, %v648_v51  ;;  %vm679_vm0 = vweird.f32 %v3243_v57 }
  0xec   : > { %v789_v31 = vmul.f32 %v3221_v38, %v652_v35 }
  0xee   : > { %v805_v51 = vmin.f32 %v789_v31, 1e+08 }
  0xf0   : > { %v3247_v23 = vpop.eup %2438 }
  0xf1   : > { %488 = vmatmul.bf16.gmra.mxu0 %v427_v7  ;;  %v654_v7 = vmul.f32 %v3226_v24, %v3204_v8  ;;  %v3239_v53 = vpop.xlane.xlu1 %603  ;;  %v664_v48 = vmul.f32 %v3247_v23, %v3224_v9  ;;  %vm670_vm14 = vweird.f32 %v3247_v23 }
  0xf2   : > { %537 = vmatmul.bf16.gmra.mxu1 %v3183_v43  ;;  %vm671_vm15 = vmor %vm669_vm13, %vm670_vm14  ;;  %vm719_vm13 = vweird.f32 %v3239_v53 }
  0xf3   : > { %v655_v3 = vmul.f32 %v3226_v24, %v654_v7 }
  0xf5   : > { %v656_v55 = vmul.f32 0.5, %v655_v3 }
  0xf7   : > { %v657_v7 = vsub.f32 1.5, %v656_v55 }
  0xfe   : > { %v454_v29 = vpop.f32.mrf.mxu0 }
  0xff   : > { %v503_v62 = vpop.f32.mrf.mxu1 }
 0x100   : > { %v504_v47 = vadd.f32 %v503_v62, %v454_v29  ;;  %v665_v29 = vmul.f32 %v3247_v23, %v664_v48  ;;  %v2441_v62 = vpop.eup %2440 }
 0x101   : > { %v674_v55 = vmul.f32 %v2441_v62, %v3243_v57  ;;  %vm680_vm1 = vweird.f32 %v2441_v62 }
 0x102   : > { %v819_v2 = vmul.f32 %v803_v54, %v504_v47  ;;  %v3269_v54 = vpop.xlane.xlu1 %594  ;;  %v666_v20 = vmul.f32 0.5, %v665_v29  ;;  %vm681_vm2 = vmor %vm679_vm0, %vm680_vm1  ;;  %vm729_vm0 = vweird.f32 %v3214_v32 }
 0x103   : > { %2442 = vrsqrt.f32 %v3269_v54  ;;  %v675_v59 = vmul.f32 %v2441_v62, %v674_v55  ;;  %vm689_vm3 = vweird.f32 %v3269_v54 }
 0x104   : > { %v3262_v58 = vsel %vm854_vm8, %v819_v2, -inf  ;;  %835 = vst [vmem:[%s3264_s16] sm:$0xff] %v819_v2  ;;  %v658_v2 = vmul.f32 %v3226_v24, %v657_v7  ;;  %v667_v8 = vsub.f32 1.5, %v666_v20  ;;  %2444 = vrsqrt.f32 %v3216_v1 }
 0x105   : > { %871 = vmax.xlane.f32.xlu0 %v3262_v58  ;;  %2446 = vrsqrt.f32 %v3206_v56 }
 0x106   : > { %v456_v61 = vpop.f32.mrf.mxu0  ;;  %v668_v29 = vmul.f32 %v3247_v23, %v667_v8  ;;  %2448 = vrsqrt.f32 %v3239_v53 }
 0x107   : > { %v505_v39 = vpop.f32.mrf.mxu1  ;;  %2450 = vrsqrt.f32 %v3214_v32 }
 0x108   : > { %v506_v3 = vadd.f32 %v505_v39, %v456_v61  ;;  %v662_v61 = vsel %vm661_vm12, %v3226_v24, %v658_v2  ;;  %2452 = vrsqrt.f32 %v3198_v34 }
 0x109   : > { %v2443_v39 = vpop.eup %2442  ;;  %v790_v7 = vmul.f32 %v3221_v38, %v662_v61  ;;  %2454 = vrsqrt.f32 %v3194_v52 }
 0x10a   : > { %v3278_v47 = vmul.f32 %v804_v40, %v506_v3  ;;  %v676_v3 = vmul.f32 0.5, %v675_v59  ;;  %v684_v31 = vmul.f32 %v2443_v39, %v3269_v54  ;;  %vm690_vm4 = vweird.f32 %v2443_v39 }
 0x10b   : > { %v806_v2 = vmin.f32 %v790_v7, 1e+08  ;;  %vm691_vm5 = vmor %vm689_vm3, %vm690_vm4  ;;  %2456 = vrsqrt.f32 %v3179_v33  ;;  %vm739_vm3 = vweird.f32 %v3198_v34 }
 0x10c   : > { %836 = vst [vmem:[%s3264_s16 + $0x8] sm:$0xff] %v3278_v47  ;;  %v677_v9 = vsub.f32 1.5, %v676_v3  ;;  %v685_v55 = vmul.f32 %v2443_v39, %v684_v31  ;;  %2458 = vrsqrt.f32 %v3192_v0 }
 0x10d   : > { %2460 = vrsqrt.f32 %v3174_v50 }
 0x10e   : > { %v459_v41 = vpop.f32.mrf.mxu0  ;;  %v686_v7 = vmul.f32 0.5, %v685_v55 }
 0x10f   : > { %v508_v48 = vpop.f32.mrf.mxu1 }
 0x110   : > { %v509_v35 = vadd.f32 %v508_v48, %v459_v41  ;;  %v672_v41 = vsel %vm671_vm15, %v3247_v23, %v668_v29  ;;  %v687_v31 = vsub.f32 1.5, %v686_v7 }
 0x111   : > { %v791_v8 = vmul.f32 %v3221_v38, %v672_v41 }
 0x112   : > { %v3288_v40 = vmul.f32 %v805_v51, %v509_v35  ;;  %v2445_v51 = vpop.eup %2444  ;;  %v678_v35 = vmul.f32 %v2441_v62, %v677_v9 }
 0x113   : > { %v694_v61 = vmul.f32 %v2445_v51, %v3216_v1  ;;  %v807_v23 = vmin.f32 %v791_v8, 1e+08  ;;  %vm700_vm7 = vweird.f32 %v2445_v51 }
 0x114   : > { %837 = vst [vmem:[%s3264_s16 + $0x10] sm:$0xff] %v3288_v40  ;;  %vm701_vm9 = vmor %vm699_vm6, %vm700_vm7  ;;  %vm749_vm6 = vweird.f32 %v3194_v52 }
 0x115   : > { %v695_v29 = vmul.f32 %v2445_v51, %v694_v61 }
 0x116   : > { %v461_v24 = vpop.f32.mrf.mxu0 }
 0x117   : > { %v510_v20 = vpop.f32.mrf.mxu1  ;;  %v696_v41 = vmul.f32 0.5, %v695_v29 }
 0x118   : > { %v511_v48 = vadd.f32 %v510_v20, %v461_v24  ;;  %v682_v24 = vsel %vm681_vm2, %v2441_v62, %v678_v35  ;;  %v2447_v20 = vpop.eup %2446 }
 0x119   : > { %v792_v9 = vmul.f32 %v3221_v38, %v682_v24  ;;  %v704_v55 = vmul.f32 %v2447_v20, %v3206_v56  ;;  %v697_v35 = vsub.f32 1.5, %v696_v41  ;;  %vm710_vm11 = vweird.f32 %v2447_v20 }
 0x11a   : > { %v3299_v59 = vmul.f32 %v806_v2, %v511_v48  ;;  %v688_v48 = vmul.f32 %v2443_v39, %v687_v31  ;;  %vm711_vm12 = vmor %vm709_vm10, %vm710_vm11  ;;  %vm759_vm10 = vweird.f32 %v3179_v33 }
 0x11b   : > { %v808_v62 = vmin.f32 %v792_v9, 1e+08  ;;  %v705_v61 = vmul.f32 %v2447_v20, %v704_v55  ;;  %v698_v31 = vmul.f32 %v2445_v51, %v697_v35 }
 0x11c   : > { %838 = vst [vmem:[%s3264_s16 + $0x18] sm:$0xff] %v3299_v59  ;;  %v692_v7 = vsel %vm691_vm5, %v2443_v39, %v688_v48 }
 0x11d   : > { %v706_v29 = vmul.f32 0.5, %v705_v61  ;;  %v702_v48 = vsel %vm701_vm9, %v2445_v51, %v698_v31 }
 0x11e   : > { %v464_v3 = vpop.f32.mrf.mxu0  ;;  %v794_v61 = vmul.f32 %v3221_v38, %v702_v48 }
 0x11f   : > { %v513_v57 = vpop.f32.mrf.mxu1  ;;  %v707_v55 = vsub.f32 1.5, %v706_v29 }
 0x120   : > { %v514_v37 = vadd.f32 %v513_v57, %v464_v3  ;;  %v2449_v3 = vpop.eup %2448  ;;  %v810_v51 = vmin.f32 %v794_v61, 1e+08 }
 0x121   : > { %v714_v24 = vmul.f32 %v2449_v3, %v3239_v53  ;;  %v708_v35 = vmul.f32 %v2447_v20, %v707_v55  ;;  %vm720_vm14 = vweird.f32 %v2449_v3 }
 0x122   : > { %v3306_v2 = vmul.f32 %v807_v23, %v514_v37  ;;  %v793_v37 = vmul.f32 %v3221_v38, %v692_v7  ;;  %vm721_vm15 = vmor %vm719_vm13, %vm720_vm14  ;;  %vm769_vm13 = vweird.f32 %v3192_v0 }
 0x123   : > { %v715_v41 = vmul.f32 %v2449_v3, %v714_v24  ;;  %v712_v24 = vsel %vm711_vm12, %v2447_v20, %v708_v35 }
 0x124   : > { %839 = vst [vmem:[%s3264_s16 + $0x20] sm:$0xff] %v3306_v2  ;;  %v809_v39 = vmin.f32 %v793_v37, 1e+08 }
 0x126   : > { %v466_v8 = vpop.f32.mrf.mxu0 }
 0x127   : > { %v515_v54 = vpop.f32.mrf.mxu1 }
 0x128   : > { %v516_v57 = vadd.f32 %v515_v54, %v466_v8  ;;  %v2451_v8 = vpop.eup %2450 }
 0x129   : > { %v724_v7 = vmul.f32 %v2451_v8, %v3214_v32  ;;  %vm730_vm1 = vweird.f32 %v2451_v8 }
 0x12a   : > { %v3315_v23 = vmul.f32 %v808_v62, %v516_v57  ;;  %v716_v57 = vmul.f32 0.5, %v715_v41  ;;  %vm731_vm2 = vmor %vm729_vm0, %vm730_vm1  ;;  %vm779_vm0 = vweird.f32 %v3174_v50 }
 0x12b   : > { %v725_v29 = vmul.f32 %v2451_v8, %v724_v7 }
 0x12c   : > { %840 = vst [vmem:[%s3264_s16 + $0x28] sm:$0xff] %v3315_v23  ;;  %v717_v31 = vsub.f32 1.5, %v716_v57 }
 0x12d   : > { %v726_v48 = vmul.f32 0.5, %v725_v29 }
 0x12e   : > { %v469_v9 = vpop.f32.mrf.mxu0 }
 0x12f   : > { %v518_v1 = vpop.f32.mrf.mxu1  ;;  %v727_v7 = vsub.f32 1.5, %v726_v48 }
 0x130   : > { %v519_v54 = vadd.f32 %v518_v1, %v469_v9  ;;  %v2453_v9 = vpop.eup %2452 }
 0x131   : > { %v734_v41 = vmul.f32 %v2453_v9, %v3198_v34  ;;  %vm740_vm4 = vweird.f32 %v2453_v9 }
 0x132   : > { %v3322_v62 = vmul.f32 %v809_v39, %v519_v54  ;;  %v795_v39 = vmul.f32 %v3221_v38, %v712_v24  ;;  %v718_v54 = vmul.f32 %v2449_v3, %v717_v31  ;;  %vm741_vm5 = vmor %vm739_vm3, %vm740_vm4 }
 0x133   : > { %v735_v35 = vmul.f32 %v2453_v9, %v734_v41 }
 0x134   : > { %841 = vst [vmem:[%s3264_s16 + $0x30] sm:$0xff] %v3322_v62  ;;  %v811_v20 = vmin.f32 %v795_v39, 1e+08  ;;  %v722_v57 = vsel %vm721_vm15, %v2449_v3, %v718_v54 }
 0x135   : > { %v796_v29 = vmul.f32 %v3221_v38, %v722_v57  ;;  %v736_v24 = vmul.f32 0.5, %v735_v35 }
 0x136   : > { %v471_v37 = vpop.f32.mrf.mxu0 }
 0x137   : > { %v520_v56 = vpop.f32.mrf.mxu1  ;;  %v812_v3 = vmin.f32 %v796_v29, 1e+08  ;;  %v737_v48 = vsub.f32 1.5, %v736_v24 }
 0x138   : > { %v521_v1 = vadd.f32 %v520_v56, %v471_v37  ;;  %v2455_v37 = vpop.eup %2454 }
 0x139   : > { %v744_v31 = vmul.f32 %v2455_v37, %v3194_v52  ;;  %vm750_vm7 = vweird.f32 %v2455_v37 }
 0x13a   : > { %v3331_v55 = vmul.f32 %v810_v51, %v521_v1  ;;  %v728_v1 = vmul.f32 %v2451_v8, %v727_v7  ;;  %vm751_vm9 = vmor %vm749_vm6, %vm750_vm7 }
 0x13b   : > { %v745_v41 = vmul.f32 %v2455_v37, %v744_v31 }
 0x13c   : > { %842 = vst [vmem:[%s3264_s16 + $0x38] sm:$0xff] %v3331_v55  ;;  %v732_v54 = vsel %vm731_vm2, %v2451_v8, %v728_v1 }
 0x13d   : > { %v746_v57 = vmul.f32 0.5, %v745_v41 }
 0x13e   : > { %v474_v61 = vpop.f32.mrf.mxu0 }
 0x13f   : > { %v523_v53 = vpop.f32.mrf.mxu1  ;;  %v747_v24 = vsub.f32 1.5, %v746_v57 }
 0x140   : > { %v524_v56 = vadd.f32 %v523_v53, %v474_v61  ;;  %v2457_v61 = vpop.eup %2456 }
 0x141   : > { %v754_v7 = vmul.f32 %v2457_v61, %v3179_v33  ;;  %vm760_vm11 = vweird.f32 %v2457_v61 }
 0x142   : > { %v3338_v51 = vmul.f32 %v811_v20, %v524_v56  ;;  %v797_v20 = vmul.f32 %v3221_v38, %v732_v54  ;;  %v738_v56 = vmul.f32 %v2453_v9, %v737_v48  ;;  %vm761_vm12 = vmor %vm759_vm10, %vm760_vm11 }
 0x143   : > { %v755_v31 = vmul.f32 %v2457_v61, %v754_v7 }
 0x144   : > { %843 = vst [vmem:[%s3264_s16 + $0x40] sm:$0xff] %v3338_v51  ;;  %v813_v8 = vmin.f32 %v797_v20, 1e+08  ;;  %v742_v1 = vsel %vm741_vm5, %v2453_v9, %v738_v56 }
 0x145   : > { %v798_v41 = vmul.f32 %v3221_v38, %v742_v1  ;;  %v756_v48 = vmul.f32 0.5, %v755_v31 }
 0x146   : > { %v476_v39 = vpop.f32.mrf.mxu0 }
 0x147   : > { %v525_v32 = vpop.f32.mrf.mxu1  ;;  %v814_v20 = vmin.f32 %v798_v41, 1e+08  ;;  %v757_v7 = vsub.f32 1.5, %v756_v48 }
 0x148   : > { %v526_v53 = vadd.f32 %v525_v32, %v476_v39  ;;  %v2459_v39 = vpop.eup %2458 }
 0x149   : > { %v764_v54 = vmul.f32 %v2459_v39, %v3192_v0  ;;  %vm770_vm14 = vweird.f32 %v2459_v39 }
 0x14a   : > { %v3347_v35 = vmul.f32 %v812_v3, %v526_v53  ;;  %v748_v53 = vmul.f32 %v2455_v37, %v747_v24  ;;  %vm771_vm15 = vmor %vm769_vm13, %vm770_vm14 }
 0x14b   : > { %v765_v57 = vmul.f32 %v2459_v39, %v764_v54 }
 0x14c   : > { %844 = vst [vmem:[%s3264_s16 + $0x48] sm:$0xff] %v3347_v35  ;;  %v752_v56 = vsel %vm751_vm9, %v2455_v37, %v748_v53 }
 0x14d   : > { %v799_v31 = vmul.f32 %v3221_v38, %v752_v56  ;;  %v766_v1 = vmul.f32 0.5, %v765_v57 }
 0x14e   : > { %v479_v29 = vpop.f32.mrf.mxu0 }
 0x14f   : > { %v528_v34 = vpop.f32.mrf.mxu1  ;;  %v815_v48 = vmin.f32 %v799_v31, 1e+08  ;;  %v767_v37 = vsub.f32 1.5, %v766_v1 }
 0x150   : > { %v529_v32 = vadd.f32 %v528_v34, %v479_v29  ;;  %v758_v34 = vmul.f32 %v2457_v61, %v757_v7 }
 0x151   : > { %v768_v57 = vmul.f32 %v2459_v39, %v767_v37 }
 0x152   : > { %v3353_v3 = vmul.f32 %v813_v8, %v529_v32  ;;  %v2461_v8 = vpop.eup %2460  ;;  %v762_v53 = vsel %vm761_vm12, %v2457_v61, %v758_v34 }
 0x153   : > { %v774_v32 = vmul.f32 %v2461_v8, %v3174_v50  ;;  %v800_v7 = vmul.f32 %v3221_v38, %v762_v53  ;;  %v772_v34 = vsel %vm771_vm15, %v2459_v39, %v768_v57  ;;  %vm780_vm1 = vweird.f32 %v2461_v8 }
 0x154   : > { %845 = vst [vmem:[%s3264_s16 + $0x50] sm:$0xff] %v3353_v3  ;;  %vm781_vm2 = vmor %vm779_vm0, %vm780_vm1  ;;  %v863_v50 = vsel %vm854_vm8, %v3338_v51, -inf }
 0x156   : > { %v481_v9 = vpop.f32.mrf.mxu0 }
 0x157   : > { %v530_v52 = vpop.f32.mrf.mxu1 }
 0x158   : > { %v531_v29 = vadd.f32 %v530_v52, %v481_v9  ;;  %v775_v9 = vmul.f32 %v2461_v8, %v774_v32  ;;  %v801_v32 = vmul.f32 %v3221_v38, %v772_v34 }
 0x15a   : > { %v3362_v24 = vmul.f32 %v814_v20, %v531_v29  ;;  %v776_v56 = vmul.f32 0.5, %v775_v9  ;;  %v816_v29 = vmin.f32 %v800_v7, 1e+08  ;;  %v817_v53 = vmin.f32 %v801_v32, 1e+08 }
 0x15b   : > { %v3427_v32 = vcvt.s32.f32 %v3237_v30 }
 0x15c   : > { %846 = vst [vmem:[%s3264_s16 + $0x58] sm:$0xff] %v3362_v24  ;;  %v777_v1 = vsub.f32 1.5, %v776_v56 }
 0x15e   : > { %v484_v41 = vpop.f32.mrf.mxu0  ;;  %v778_v37 = vmul.f32 %v2461_v8, %v777_v1  ;;  %v866_v1 = vsel %vm854_vm8, %v3362_v24, -inf  ;;  %v3423_v24 = vsel %vm854_vm8, %v3315_v23, -inf }
 0x15f   : > { %v533_v54 = vpop.f32.mrf.mxu1 }
 0x160   : > { %v534_v33 = vadd.f32 %v533_v54, %v484_v41  ;;  %v782_v9 = vsel %vm781_vm2, %v2461_v8, %v778_v37  ;;  %v859_v8 = vsel %vm854_vm8, %v3306_v2, -inf  ;;  %v864_v2 = vsel %vm854_vm8, %v3347_v35, -inf }
 0x161   : > { %v3417_v35 = vsel %vm854_vm8, %v3331_v55, -inf }
 0x162   : > { %v831_v20 = vmul.f32 %v815_v48, %v534_v33  ;;  %v857_v48 = vsel %vm854_vm8, %v3288_v40, -inf  ;;  %v802_v40 = vmul.f32 %v3221_v38, %v782_v9  ;;  %v865_v38 = vsel %vm854_vm8, %v3353_v3, -inf }
 0x163   : > { %v861_v3 = vsel %vm854_vm8, %v3322_v62, -inf }
 0x164   : > { %v3371_v52 = vsel %vm854_vm8, %v831_v20, -inf  ;;  %847 = vst [vmem:[%s3264_s16 + $0x60] sm:$0xff] %v831_v20 }
 0x165   : > { %895 = vmax.xlane.f32.xlu0 %v3371_v52 }
 0x166   : > { %v486_v61 = vpop.f32.mrf.mxu0 }
 0x167   : > { %v535_v31 = vpop.f32.mrf.mxu1 }
 0x168   : > { %v536_v0 = vadd.f32 %v535_v31, %v486_v61 }
 0x16a   : > { %v832_v41 = vmul.f32 %v816_v29, %v536_v0  ;;  %v818_v29 = vmin.f32 %v802_v40, 1e+08  ;;  %v856_v0 = vsel %vm854_vm8, %v3278_v47, -inf  ;;  %v858_v47 = vsel %vm854_vm8, %v3299_v59, -inf }
 0x16c   : > { %848 = vst [vmem:[%s3264_s16 + $0x68] sm:$0xff] %v832_v41  ;;  %v868_v51 = vsel %vm854_vm8, %v832_v41, -inf }
 0x16d   : > { %875 = vmax.xlane.f32.xlu0 %v857_v48 }
 0x16e   : > { %v489_v54 = vpop.f32.mrf.mxu0 }
 0x16f   : > { %v538_v39 = vpop.f32.mrf.mxu1 }
 0x170   : > { %v539_v33 = vadd.f32 %v538_v39, %v489_v54 }
 0x172   : > { %v833_v20 = vmul.f32 %v817_v53, %v539_v33 }
 0x174   : > { %v869_v7 = vsel %vm854_vm8, %v833_v20, -inf  ;;  %849 = vst [vmem:[%s3264_s16 + $0x70] sm:$0xff] %v833_v20 }
 0x175   : > { %887 = vmax.xlane.f32.xlu0 %v863_v50  ;;  %899 = vmax.xlane.f32.xlu2 %v869_v7 }
 0x176   : > { %v491_v57 = vpop.f32.mrf.mxu0 }
 0x177   : > { %v540_v56 = vpop.f32.mrf.mxu1 }
 0x178   : > { %v541_v61 = vadd.f32 %v540_v56, %v491_v57  ;;  %v872_v62 = vpop.xlane.xlu0 %871 }
 0x179   : > { %vm903_vm3 = vcmp.eq.f32.partialorder %v3262_v58, %v872_v62 }
 0x17a   : > { %v834_v31 = vmul.f32 %v818_v29, %v541_v61  ;;  %v919_v59 = vsel %vm903_vm3, %v3427_v32, 128.0 }
 0x17c   : > { %v870_v34 = vsel %vm854_vm8, %v834_v31, -inf  ;;  %850 = vst [vmem:[%s3264_s16 + $0x78] sm:$0xff] %v834_v31 }
 0x17d   : > { %879 = vmax.xlane.f32.xlu0 %v859_v8  ;;  %897 = vmax.xlane.f32.xlu2 %v868_v51 }
 0x17e   : > { %901 = vmax.xlane.f32.xlu1 %v870_v34 }
 0x185   : > { %891 = vmax.xlane.f32.xlu2 %v865_v38 }
 0x186   : > { %873 = vmax.xlane.f32.xlu1 %v856_v0 }
 0x18d   : > { %889 = vmax.xlane.f32.xlu2 %v864_v2 }
 0x18e   : > { %893 = vmax.xlane.f32.xlu1 %v866_v1 }
 0x195   : > { %883 = vmax.xlane.f32.xlu2 %v861_v3 }
 0x196   : > { %877 = vmax.xlane.f32.xlu1 %v858_v47 }
 0x19e   : > { %885 = vmax.xlane.f32.xlu1 %v3417_v35 }
 0x1a6   : > { %881 = vmax.xlane.f32.xlu1 %v3423_v24 }
 0x1ae   : > { %935 = vmin.xlane.f32.xlu1 %v919_v59 }
 0x1d8   : > { %v896_v55 = vpop.xlane.xlu0 %895 }
 0x1d9   : > { %vm915_vm4 = vcmp.eq.f32.partialorder %v3371_v52, %v896_v55 }
 0x1da   : > { %v931_v41 = vsel %vm915_vm4, %v3427_v32, 128.0  ;;  %vm1138_vm4 = vcmask 7168  }
 0x1db   : > { %959 = vmin.xlane.f32.xlu1 %v931_v41 }
 0x1e0   : > { %v876_v37 = vpop.xlane.xlu0 %875 }
 0x1e1   : > { %vm905_vm8 = vcmp.eq.f32.partialorder %v857_v48, %v876_v37 }
 0x1e2   : > { %v921_v23 = vsel %vm905_vm8, %v3427_v32, 128.0 }
 0x1e3   : > { %939 = vmin.xlane.f32.xlu1 %v921_v23 }
 0x1e8   : > { %v888_v54 = vpop.xlane.xlu0 %887  ;;  %v900_v53 = vpop.xlane.xlu2 %899 }
 0x1e9   : > { %vm911_vm5 = vcmp.eq.f32.partialorder %v863_v50, %v888_v54  ;;  %vm917_vm6 = vcmp.eq.f32.partialorder %v869_v7, %v900_v53 }
 0x1ea   : > { %v933_v30 = vsel %vm917_vm6, %v3427_v32, 128.0  ;;  %v927_v58 = vsel %vm911_vm5, %v3427_v32, 128.0 }
 0x1eb   : > { %963 = vmin.xlane.f32.xlu0 %v933_v30  ;;  %951 = vmin.xlane.f32.xlu1 %v927_v58 }
 0x1f0   : > { %v880_v39 = vpop.xlane.xlu0 %879  ;;  %v898_v52 = vpop.xlane.xlu2 %897 }
 0x1f1   : > { %vm907_vm7 = vcmp.eq.f32.partialorder %v859_v8, %v880_v39  ;;  %vm916_vm9 = vcmp.eq.f32.partialorder %v868_v51, %v898_v52  ;;  %v902_v33 = vpop.xlane.xlu1 %901 }
 0x1f2   : > { %vm918_vm10 = vcmp.eq.f32.partialorder %v870_v34, %v902_v33  ;;  %v932_v48 = vsel %vm916_vm9, %v3427_v32, 128.0  ;;  %v923_v9 = vsel %vm907_vm7, %v3427_v32, 128.0 }
 0x1f3   : > { %961 = vmin.xlane.f32.xlu0 %v932_v48  ;;  %943 = vmin.xlane.f32.xlu1 %v923_v9  ;;  %v934_v20 = vsel %vm918_vm10, %v3427_v32, 128.0 }
 0x1f4   : > { %965 = vmin.xlane.f32.xlu2 %v934_v20 }
 0x1f8   : > { %v892_v50 = vpop.xlane.xlu2 %891 }
 0x1f9   : > { %vm913_vm11 = vcmp.eq.f32.partialorder %v865_v38, %v892_v50  ;;  %v874_v7 = vpop.xlane.xlu1 %873 }
 0x1fa   : > { %vm904_vm12 = vcmp.eq.f32.partialorder %v856_v0, %v874_v7  ;;  %v929_v40 = vsel %vm913_vm11, %v3427_v32, 128.0 }
 0x1fb   : > { %955 = vmin.xlane.f32.xlu0 %v929_v40  ;;  %v920_v57 = vsel %vm904_vm12, %v3427_v32, 128.0 }
 0x1fc   : > { %937 = vmin.xlane.f32.xlu2 %v920_v57 }
 0x200   : > { %v890_v56 = vpop.xlane.xlu2 %889 }
 0x201   : > { %vm912_vm13 = vcmp.eq.f32.partialorder %v864_v2, %v890_v56  ;;  %v894_v61 = vpop.xlane.xlu1 %893 }
 0x202   : > { %vm914_vm14 = vcmp.eq.f32.partialorder %v866_v1, %v894_v61  ;;  %v928_v29 = vsel %vm912_vm13, %v3427_v32, 128.0  ;;  %v4310_v1 = vlaneseq }
 0x203   : > { %953 = vmin.xlane.f32.xlu0 %v928_v29  ;;  %v930_v31 = vsel %vm914_vm14, %v3427_v32, 128.0 }
 0x204   : > { %957 = vmin.xlane.f32.xlu2 %v930_v31  ;;  %v3450_v62 = vshrl.u32 %v4310_v1, 7 }
 0x206   : > { %v1029_v41 = vadd.s32 96, %v3450_v62  ;;  %v1019_v23 = vadd.s32 16, %v3450_v62  ;;  %v1031_v58 = vadd.s32 112, %v3450_v62  ;;  %v1025_v39 = vadd.s32 64, %v3450_v62 }
 0x207   : > { %v1030_v20 = vadd.s32 104, %v3450_v62  ;;  %v1021_v50 = vadd.s32 32, %v3450_v62  ;;  %v1032_v7 = vadd.s32 120, %v3450_v62 }
 0x208   : > { %v884_v8 = vpop.xlane.xlu2 %883 }
 0x209   : > { %vm909_vm15 = vcmp.eq.f32.partialorder %v861_v3, %v884_v8  ;;  %v878_v51 = vpop.xlane.xlu1 %877  ;;  %v3454_v3 = vstv %s4260_s19 }
 0x20a   : > { %vm906_vm0 = vcmp.eq.f32.partialorder %v858_v47, %v878_v51  ;;  %v925_v34 = vsel %vm909_vm15, %v3427_v32, 128.0  ;;  %v3477_v37 = vadd.s32 %v3454_v3, %v1029_v41  ;;  %v3486_v30 = vadd.s32 %v3454_v3, %v1019_v23 }
 0x20b   : > { %947 = vmin.xlane.f32.xlu0 %v925_v34  ;;  %v922_v38 = vsel %vm906_vm0, %v3427_v32, 128.0  ;;  %v3499_v48 = vadd.s32 %v3454_v3, %v1031_v58  ;;  %v3502_v9 = vadd.s32 %v3454_v3, %v1025_v39  ;;  %v3519_v29 = vadd.s32 %v3454_v3, %v1030_v20 }
 0x20c   : > { %941 = vmin.xlane.f32.xlu2 %v922_v38  ;;  %vm4251_vm8 = vcmp.lt.s32.totalorder %v3477_v37, 256  ;;  %vm1052_vm5 = vcmp.lt.s32.totalorder %v3486_v30, 256  ;;  %v3522_v31 = vadd.s32 %v3454_v3, %v1021_v50  ;;  %v3527_v8 = vadd.s32 %v3454_v3, %v1032_v7 }
 0x20d   : > { %vm4248_vm6 = vcmp.lt.s32.totalorder %v3499_v48, 256  ;;  %vm4257_vm7 = vcmp.lt.s32.totalorder %v3502_v9, 256  ;;  %v1027_v51 = vadd.s32 80, %v3450_v62  ;;  %vm4249_vm11 = vcmp.lt.s32.totalorder %v3519_v29, 256 }
 0x20e   : > { %vm1054_vm12 = vcmp.lt.s32.totalorder %v3522_v31, 256  ;;  %v1018_v34 = vadd.s32 8, %v3450_v62  ;;  %vm4247_vm13 = vcmp.lt.s32.totalorder %v3527_v8, 256 }
 0x20f   : > { %v3547_v23 = vadd.s32 %v3454_v3, %v1027_v51 }
 0x211   : > { %v886_v0 = vpop.xlane.xlu1 %885 }
 0x212   : > { %vm910_vm1 = vcmp.eq.f32.partialorder %v3417_v35, %v886_v0  ;;  %v3460_v35 = vadd.s32 %v3454_v3, %v3450_v62 }
 0x213   : > { %v926_v2 = vsel %vm910_vm1, %v3427_v32, 128.0  ;;  %vm1060_vm1 = vcmp.lt.s32.totalorder %v3547_v23, 256 }
 0x214   : > { %949 = vmin.xlane.f32.xlu2 %v926_v2  ;;  %vm4258_vm3 = vcmp.lt.s32.totalorder %v3460_v35, 256  ;;  %v4240_v2 = vmov 0.0  }
 0x219   : > { %v882_v47 = vpop.xlane.xlu1 %881 }
 0x21a   : > { %vm908_vm2 = vcmp.eq.f32.partialorder %v3423_v24, %v882_v47 }
 0x21b   : > { %v924_v59 = vsel %vm908_vm2, %v3427_v32, 128.0 }
 0x21c   : > { %945 = vmin.xlane.f32.xlu2 %v924_v59 }
 0x221   : > { %v3468_v55 = vpop.xlane.xlu1 %935 }
 0x222   : > { %v1122_v24 = vsel %vm4258_vm3, %v3468_v55, -1.0  ;;  %vm967_vm0 = vcmp.eq.f32.partialorder %v3427_v32, %v3468_v55 }
 0x223   : > { %1139 = vst.msk [vmem:[%s3466_s22] sm:$0xff] %vm1138_vm4, %v1122_v24 }
 0x24e   : > { %v960_v54 = vpop.xlane.xlu1 %959 }
 0x24f   : > { %v1134_v53 = vsel %vm4251_vm8, %v960_v54, -1.0  ;;  %vm979_vm9 = vcmp.eq.f32.partialorder %v3427_v32, %v960_v54 }
 0x250   : > { %1151 = vst.msk [vmem:[%s3466_s22 + $0x60] sm:$0xff] %vm1138_vm4, %v1134_v53  ;;  %v2225_v47 = vsel %vm979_vm9, 1.0, %v4240_v2  ;;  %v3555_v53 = vadd.s32 %v3454_v3, %v1018_v34  ;;  %v1026_v34 = vadd.s32 72, %v3450_v62 }
 0x251   : > { %v3571_v50 = vsel %vm4251_vm8, %v2225_v47, 0.0 }
 0x252   : > { %vm1051_vm2 = vcmp.lt.s32.totalorder %v3555_v53, 256 }
 0x256   : > { %v3491_v52 = vpop.xlane.xlu1 %939 }
 0x257   : > { %v1124_v33 = vsel %vm1052_vm5, %v3491_v52, -1.0 }
 0x258   : > { %1141 = vst.msk [vmem:[%s3466_s22 + $0x10] sm:$0xff] %vm1138_vm4, %v1124_v33 }
 0x25e   : > { %v964_v40 = vpop.xlane.xlu0 %963  ;;  %v3509_v57 = vpop.xlane.xlu1 %951 }
 0x25f   : > { %v1136_v56 = vsel %vm4248_vm6, %v964_v40, -1.0  ;;  %v1130_v61 = vsel %vm4257_vm7, %v3509_v57, -1.0  ;;  %vm981_vm10 = vcmp.eq.f32.partialorder %v3427_v32, %v964_v40 }
 0x260   : > { %1153 = vst.msk [vmem:[%s3466_s22 + $0x70] sm:$0xff] %vm1138_vm4, %v1136_v56  ;;  %v2227_v1 = vsel %vm981_vm10, 1.0, %v4240_v2 }
 0x261   : > { %1147 = vst.msk [vmem:[%s3466_s22 + $0x40] sm:$0xff] %vm1138_vm4, %v1130_v61  ;;  %v3563_v33 = vsel %vm4248_vm6, %v2227_v1, 0.0 }
 0x266   : > { %v962_v38 = vpop.xlane.xlu0 %961  ;;  %v3536_v0 = vpop.xlane.xlu1 %943 }
 0x267   : > { %vm980_vm14 = vcmp.eq.f32.partialorder %v3427_v32, %v962_v38  ;;  %v1135_v59 = vsel %vm4249_vm11, %v962_v38, -1.0  ;;  %v966_v24 = vpop.xlane.xlu2 %965  ;;  %v1126_v41 = vsel %vm1054_vm12, %v3536_v0, -1.0  ;;  %v1028_v38 = vadd.s32 88, %v3450_v62 }
 0x268   : > { %1152 = vst.msk [vmem:[%s3466_s22 + $0x68] sm:$0xff] %vm1138_vm4, %v1135_v59  ;;  %vm982_vm15 = vcmp.eq.f32.partialorder %v3427_v32, %v966_v24  ;;  %v1137_v54 = vsel %vm4247_vm13, %v966_v24, -1.0  ;;  %v2226_v58 = vsel %vm980_vm14, 1.0, %v4240_v2  ;;  %v3598_v24 = vsel %vm967_vm0, 1.0, %v4240_v2  ;;  %vm3621_vm14 = vmpackc.low %vm1051_vm2, %vm4258_vm3 }
 0x269   : > { %1154 = vst.msk [vmem:[%s3466_s22 + $0x78] sm:$0xff] %vm1138_vm4, %v1137_v54  ;;  %v2228_v39 = vsel %vm982_vm15, 1.0, %v4240_v2  ;;  %v3567_v20 = vsel %vm4249_vm11, %v2226_v58, 0.0  ;;  %v3581_v40 = vpack.c.bf16 %v2226_v58, %v2225_v47 }
 0x26a   : > { %1143 = vst.msk [vmem:[%s3466_s22 + $0x20] sm:$0xff] %vm1138_vm4, %v1126_v41  ;;  %v3577_v7 = vsel %vm4247_vm13, %v2228_v39, 0.0  ;;  %2230 = vmatpush.xpose.msk.msra.mxu2 %vm4247_vm13, %v2228_v39  ;;  %v3585_v61 = vpack.c.bf16 %v2228_v39, %v2227_v1  ;;  %v3609_v39 = vadd.s32 %v3454_v3, %v1026_v34 }
 0x26c   : > { %vm4256_vm15 = vcmp.lt.s32.totalorder %v3609_v39, 256 }
 0x26e   : > { %2231 = vmatpush.xpose.msk.msra.mxu2 %vm4248_vm6, %v2227_v1  ;;  %v956_v59 = vpop.xlane.xlu0 %955 }
 0x26f   : > { %vm977_vm9 = vcmp.eq.f32.partialorder %v3427_v32, %v956_v59  ;;  %v1132_v55 = vsel %vm1060_vm1, %v956_v59, -1.0  ;;  %v938_v41 = vpop.xlane.xlu2 %937 }
 0x270   : > { %1149 = vst.msk [vmem:[%s3466_s22 + $0x50] sm:$0xff] %vm1138_vm4, %v1132_v55  ;;  %vm968_vm10 = vcmp.eq.f32.partialorder %v3427_v32, %v938_v41  ;;  %v1123_v54 = vsel %vm1051_vm2, %v938_v41, -1.0  ;;  %v2223_v1 = vsel %vm977_vm9, 1.0, %v4240_v2  ;;  %v3626_v55 = vadd.s32 %v3454_v3, %v1028_v38 }
 0x271   : > { %v3613_v51 = vsel %vm968_vm10, 1.0, %v4240_v2  ;;  %1140 = vst.msk [vmem:[%s3466_s22 + $0x8] sm:$0xff] %vm1138_vm4, %v1123_v54  ;;  %v3630_v34 = vsel %vm1060_vm1, %v2223_v1, 0.0  ;;  %v1098_v54 = vsel %vm4258_vm3, %v3598_v24, 0.0  ;;  %v1020_v2 = vadd.s32 24, %v3450_v62 }
 0x272   : > { %2232 = vmatpush.xpose.msk.msra.mxu2 %vm4249_vm11, %v2226_v58  ;;  %v3636_v41 = vpack.c.bf16 %v3613_v51, %v3598_v24  ;;  %v1099_v38 = vsel %vm1051_vm2, %v3613_v51, 0.0  ;;  %v1023_v58 = vadd.s32 48, %v3450_v62  ;;  %vm1061_vm0 = vcmp.lt.s32.totalorder %v3626_v55, 256 }
 0x273   : > { %v1114_v56 = vpack.c.bf16 %v1099_v38, %v1098_v54  ;;  %vm969_vm10 = vcmp.eq.f32.partialorder %v3427_v32, %v3491_v52 }
 0x274   : > { %2248 = vmatmul.msk.bf16.vlgmr.msra.gmra.mxu3 %vm3621_vm14, %v3636_v41 }
 0x275   : > { %1306 = vxpose.xlu0.c.b16.start [1/8] %v1114_v56, 128  ;;  %v3661_v56 = vadd.s32 %v3454_v3, %v1023_v58 }
 0x276   : > { %2233 = vmatpush.xpose.msk.msra.mxu2 %vm4251_vm8, %v2225_v47  ;;  %v954_v4 = vpop.xlane.xlu0 %953  ;;  %v3667_v47 = vadd.s32 %v3454_v3, %v1020_v2  ;;  %v2215_v2 = vsel %vm969_vm10, 1.0, %v4314_v46  ;;  %vm975_vm8 = vcmp.eq.f32.partialorder %v3427_v32, %v3509_v57  ;;  %v1022_v57 = vadd.s32 40, %v3450_v62 }
 0x277   : > { %v1131_v54 = vsel %vm4256_vm15, %v954_v4, -1.0  ;;  %v958_v38 = vpop.xlane.xlu2 %957  ;;  %vm976_vm6 = vcmp.eq.f32.partialorder %v3427_v32, %v954_v4 }
 0x278   : > { %1148 = vst.msk [vmem:[%s3466_s22 + $0x48] sm:$0xff] %vm1138_vm4, %v1131_v54  ;;  %vm978_vm9 = vcmp.eq.f32.partialorder %v3427_v32, %v958_v38  ;;  %v1133_v6 = vsel %vm1061_vm0, %v958_v38, -1.0  ;;  %vm1053_vm13 = vcmp.lt.s32.totalorder %v3667_v47, 256  ;;  %v2222_v4 = vsel %vm976_vm6, 1.0, %v4314_v46 }
 0x279   : > { %1150 = vst.msk [vmem:[%s3466_s22 + $0x58] sm:$0xff] %vm1138_vm4, %v1133_v6  ;;  %v2224_v25 = vsel %vm978_vm9, 1.0, %v4314_v46  ;;  %vm1056_vm9 = vcmp.lt.s32.totalorder %v3661_v56, 256  ;;  %v1024_v6 = vadd.s32 56, %v3450_v62  ;;  %vm3703_vm10 = vmpackc.low %vm1053_vm13, %vm1052_vm5 }
 0x27a   : > { %v3671_v17 = vsel %vm1061_vm0, %v2224_v25, 0.0  ;;  %2234 = vmatpush.xpose.msk.msra.mxu2 %vm1061_vm0, %v2224_v25  ;;  %v3675_v54 = vpack.c.bf16 %v2224_v25, %v2223_v1 }
 0x27e   : > { %2235 = vmatpush.xpose.msk.msra.mxu2 %vm1060_vm1, %v2223_v1  ;;  %v948_v25 = vpop.xlane.xlu0 %947 }
 0x27f   : > { %v1128_v38 = vsel %vm1056_vm9, %v948_v25, -1.0  ;;  %v942_v58 = vpop.xlane.xlu2 %941 }
 0x280   : > { %1145 = vst.msk [vmem:[%s3466_s22 + $0x30] sm:$0xff] %vm1138_vm4, %v1128_v38  ;;  %vm970_vm11 = vcmp.eq.f32.partialorder %v3427_v32, %v942_v58  ;;  %v1125_v52 = vsel %vm1053_vm13, %v942_v58, -1.0  ;;  %v1041_v38 = vadd.s32 %v3454_v3, %v1024_v6  ;;  %v2221_v6 = vsel %vm975_vm8, 1.0, %v4314_v46 }
 0x281   : > { %v2216_v11 = vsel %vm970_vm11, 1.0, %v4314_v46  ;;  %1142 = vst.msk [vmem:[%s3466_s22 + $0x18] sm:$0xff] %vm1138_vm4, %v1125_v52  ;;  %v1100_v52 = vsel %vm1052_vm5, %v2215_v2, 0.0  ;;  %vm973_vm8 = vcmp.eq.f32.partialorder %v3427_v32, %v948_v25 }
 0x282   : > { %2236 = vmatpush.xpose.msk.msra.mxu2 %vm4256_vm15, %v2222_v4  ;;  %v3712_v58 = vpack.c.bf16 %v2216_v11, %v2215_v2  ;;  %v1101_v18 = vsel %vm1053_vm13, %v2216_v11, 0.0  ;;  %vm1057_vm6 = vcmp.lt.s32.totalorder %v1041_v38, 256  ;;  %vm971_vm15 = vcmp.eq.f32.partialorder %v3427_v32, %v3536_v0 }
 0x283   : > { %v1115_v12 = vpack.c.bf16 %v1101_v18, %v1100_v52  ;;  %v2219_v62 = vsel %vm973_vm8, 1.0, %v4314_v46 }
 0x284   : > { %2251 = vmatmul.msk.bf16.gmra.mxu3 %vm3703_vm10, %v3712_v58 }
 0x285   : > { %1307 = vxpose.xlu0.c.b16.cont [2/8] %v1115_v12, 128  ;;  %v1039_v12 = vadd.s32 %v3454_v3, %v1022_v57 }
 0x286   : > { %2237 = vmatpush.xpose.msk.msra.mxu2 %vm4257_vm7, %v2221_v6 }
 0x287   : > { %v950_v26 = vpop.xlane.xlu2 %949  ;;  %vm1055_vm7 = vcmp.lt.s32.totalorder %v1039_v12, 256 }
 0x288   : > { %vm974_vm11 = vcmp.eq.f32.partialorder %v3427_v32, %v950_v26  ;;  %v1129_v15 = vsel %vm1057_vm6, %v950_v26, -1.0  ;;  %v2217_v26 = vsel %vm971_vm15, 1.0, %v4314_v46  ;;  %vm3745_vm3 = vmpackc.low %vm1055_vm7, %vm1054_vm12 }
 0x289   : > { %1146 = vst.msk [vmem:[%s3466_s22 + $0x38] sm:$0xff] %vm1138_vm4, %v1129_v15  ;;  %v2220_v18 = vsel %vm974_vm11, 1.0, %v4314_v46  ;;  %v1102_v25 = vsel %vm1054_vm12, %v2217_v26, 0.0 }
 0x28a   : > { %2238 = vmatpush.xpose.msk.msra.mxu2 %vm1057_vm6, %v2220_v18 }
 0x28e   : > { %2239 = vmatpush.xpose.msk.msra.mxu2 %vm1056_vm9, %v2219_v62 }
 0x28f   : > { %v946_v15 = vpop.xlane.xlu2 %945 }
 0x290   : > { %vm972_vm11 = vcmp.eq.f32.partialorder %v3427_v32, %v946_v15  ;;  %v1127_v52 = vsel %vm1055_vm7, %v946_v15, -1.0 }
 0x291   : > { %v2218_v3 = vsel %vm972_vm11, 1.0, %v4314_v46  ;;  %1144 = vst.msk [vmem:[%s3466_s22 + $0x28] sm:$0xff] %vm1138_vm4, %v1127_v52  ;;  %v1105_v46 = vsel %vm1057_vm6, %v2220_v18, 0.0  ;;  %vm4337_vm11 = vcmp.lt.s32.totalorder %v3527_v8, 256 }
 0x292   : > { %v1103_v57 = vsel %vm1055_vm7, %v2218_v3, 0.0  ;;  %v3751_v12 = vpack.c.bf16 %v2218_v3, %v2217_v26  ;;  %2240 = vmatpush.xpose.msk.msra.mxu2 %vm1055_vm7, %v2218_v3  ;;  %vm3766_vm7 = vmpackc.low %vm1057_vm6, %vm1056_vm9  ;;  %vm4332_vm6 = vcmp.lt.s32.totalorder %v3519_v29, 256 }
 0x293   : > { %v1116_v27 = vpack.c.bf16 %v1103_v57, %v1102_v25 }
 0x294   : > { %2254 = vmatmul.msk.bf16.gmra.mxu3 %vm3745_vm3, %v3751_v12 }
 0x295   : > { %1308 = vxpose.xlu0.c.b16.cont [3/8] %v1116_v27, 128  ;;  %v1104_v27 = vsel %vm1056_vm9, %v2219_v62, 0.0  ;;  %vm4331_vm9 = vcmp.lt.s32.totalorder %v3477_v37, 256 }
 0x296   : > { %2241 = vmatpush.xpose.msk.msra.mxu2 %vm1054_vm12, %v2217_v26  ;;  %v1117_v31 = vpack.c.bf16 %v1105_v46, %v1104_v27  ;;  %vm4323_vm12 = vcmp.lt.s32.totalorder %v3460_v35, 256  ;;  %v2259_v35 = vpack.c.bf16 %v2222_v4, %v2221_v6  ;;  %vm3828_vm8 = vmpackc.low %vm4332_vm6, %vm4331_vm9 }
 0x29a   : > { %2242 = vmatpush.xpose.msk.msra.mxu2 %vm1053_vm13, %v2216_v11  ;;  %v2256_v11 = vpack.c.bf16 %v2220_v18, %v2219_v62  ;;  %vm4324_vm13 = vcmp.lt.s32.totalorder %v3609_v39, 256 }
 0x29b   : > { %v1107_v23 = vsel %vm4324_vm13, %v2222_v4, 0.0 }
 0x29e   : > { %2243 = vmatpush.xpose.msk.msra.mxu2 %vm1052_vm5, %v2215_v2  ;;  %vm3779_vm5 = vmpackc.low %vm1061_vm0, %vm1060_vm1  ;;  %vm4325_vm1 = vcmp.lt.s32.totalorder %v3502_v9, 256 }
 0x29f   : > { %vm4329_vm0 = vmmov %vm4325_vm1 }
 0x2a2   : > { %2244 = vmatpush.xpose.msk.msra.mxu2 %vm1051_vm2, %v3613_v51  ;;  %vm4326_vm2 = vmmov %vm4324_vm13 }
 0x2a3   : > { %vm3798_vm15 = vmpackc.low %vm4326_vm2, %vm4325_vm1 }
 0x2a4   : > { %2257 = vmatmul.msk.bf16.gmra.mxu3 %vm3766_vm7, %v2256_v11 }
 0x2a5   : > { %1309 = vxpose.xlu0.c.b16.cont [4/8] %v1117_v31, 128 }
 0x2a6   : > { %2245 = vmatpush.xpose.msk.msra.mxu2 %vm4323_vm12, %v3598_v24 }
 0x2a9   : > { %1171 = vmatmul.f32.vlgmr.msra.gmra.mxu2 %v3427_v32 }
 0x2aa   : > { %1225 = vmatpush.bf16.msrb.mxu2 %v2912_v5  ;;  %v1106_v5 = vsel %vm4329_vm0, %v2221_v6, 0.0 }
 0x2ae   : > { %1226 = vmatpush.bf16.msrb.mxu2 %v2931_v13  ;;  %v1118_v13 = vpack.c.bf16 %v1107_v23, %v1106_v5 }
 0x2b2   : > { %1227 = vmatpush.bf16.msrb.mxu2 %v2952_v22  ;;  %v4330_v22 = vpack.c.bf16 %v3671_v17, %v3630_v34 }
 0x2b4   : > { %2260 = vmatmul.msk.bf16.gmra.mxu3 %vm3798_vm15, %v2259_v35 }
 0x2b5   : > { %1310 = vxpose.xlu0.c.b16.cont [5/8] %v1118_v13, 128 }
 0x2b6   : > { %1228 = vmatpush.bf16.msrb.mxu2 %v3006_v44  ;;  %v2733_v44 = vmov 1065369472  }
 0x2b7   : > { %1420 = vmatpush.bf16.msrb.mxu1 %v2733_v44 }
 0x2ba   : > { %1229 = vmatpush.bf16.msrb.mxu2 %v3059_v14 }
 0x2bb   : > { %1421 = vmatpush.bf16.msrb.mxu1 %v2733_v44 }
 0x2be   : > { %1230 = vmatpush.bf16.msrb.mxu2 %v3100_v19  ;;  %v4340_v19 = vpack.c.bf16 %v3577_v7, %v3563_v33 }
 0x2bf   : > { %1422 = vmatpush.bf16.msrb.mxu1 %v2733_v44 }
 0x2c2   : > { %1231 = vmatpush.bf16.msrb.mxu2 %v3118_v63 }
 0x2c3   : > { %1423 = vmatpush.bf16.msrb.mxu1 %v2733_v44 }
 0x2c4   : > { %2263 = vmatmul.msk.bf16.gmra.mxu3 %vm3779_vm5, %v3675_v54 }
 0x2c5   : > { %1311 = vxpose.xlu0.c.b16.cont [6/8] %v4330_v22, 128 }
 0x2c6   : > { %1232 = vmatpush.bf16.msrb.mxu2 %v3138_v21  ;;  %v4335_v21 = vpack.c.bf16 %v3567_v20, %v3571_v50 }
 0x2c7   : > { %1424 = vmatpush.bf16.msrb.mxu1 %v2733_v44 }
 0x2c9   : > { %2272 = vmatmul.msk.bf16.vlgmr.msrb.gmra.mxu2 %vm3621_vm14, %v3636_v41  ;;  %vm4336_vm14 = vcmp.lt.s32.totalorder %v3499_v48, 256 }
 0x2ca   : > { %2328 = vmatpush.bf16.msra.mxu2 %v3183_v43  ;;  %vm3849_vm12 = vmpackc.low %vm4337_vm11, %vm4336_vm14 }
 0x2cb   : > { %1425 = vmatpush.bf16.msrb.mxu1 %v2733_v44 }
 0x2ce   : > { %2329 = vmatpush.bf16.msra.mxu2 %v3189_v28 }
 0x2cf   : > { %1426 = vmatpush.bf16.msrb.mxu1 %v2733_v44 }
 0x2d2   : > { %2330 = vmatpush.bf16.msra.mxu2 %v3177_v10 }
 0x2d3   : > { %1427 = vmatpush.bf16.msrb.mxu1 %v2733_v44 }
 0x2d4   : > { %2266 = vmatmul.msk.bf16.gmra.mxu3 %vm3828_vm8, %v3581_v40 }
 0x2d5   : > { %1312 = vxpose.xlu0.c.b16.cont [7/8] %v4335_v21, 128 }
 0x2d6   : > { %2331 = vmatpush.bf16.msra.mxu2 %v3162_v60 }
 0x2d9   : > { %2275 = vmatmul.msk.bf16.gmra.mxu2 %vm3703_vm10, %v3712_v58 }
 0x2da   : > { %2332 = vmatpush.bf16.msra.mxu2 %v3166_v45 }
 0x2de   : > { %2333 = vmatpush.bf16.msra.mxu2 %v3159_v49 }
 0x2e2   : > { %2334 = vmatpush.bf16.msra.mxu2 %v3155_v36 }
 0x2e4   : > { %2269 = vmatmul.msk.bf16.gmra.mxu3 %vm3849_vm12, %v3585_v61 }
 0x2e5   : > { %1313 = vxpose.xlu0.c.b16.end [8/8] %v4340_v19, 128 }
 0x2e6   : > { %2335 = vmatpush.bf16.msra.mxu2 %v3146_v42 }
 0x2e9   : > { %2278 = vmatmul.msk.bf16.gmra.mxu2 %vm3745_vm3, %v3751_v12 }
 0x2ea   : > { %2336 = vmatpush.bf16.msrb.mxu2 %v2733_v44 }
 0x2ee   : > { %2337 = vmatpush.bf16.msrb.mxu2 %v2733_v44 }
 0x2f2   : > { %2338 = vmatpush.bf16.msrb.mxu2 %v2733_v44 }
 0x2f6   : > { %2339 = vmatpush.bf16.msrb.mxu2 %v2733_v44 }
 0x2f7   : > { %v1185_v63 = vpop.f32.mrf.mxu3 }
 0x2f8   : > { %1274 = vst [vmem:[%s3866_s18] sm:$0xff] %v1185_v63 }
 0x2f9   : > { %2281 = vmatmul.msk.bf16.gmra.mxu2 %vm3766_vm7, %v2256_v11 }
 0x2fa   : > { %2340 = vmatpush.bf16.msrb.mxu2 %v2733_v44 }
 0x2fe   : > { %2341 = vmatpush.bf16.msrb.mxu2 %v2733_v44 }
 0x2ff   : > { %v1187_v42 = vpop.f32.mrf.mxu3 }
 0x300   : > { %1276 = vst [vmem:[%s3866_s18 + $0x10] sm:$0xff] %v1187_v42 }
 0x302   : > { %2342 = vmatpush.bf16.msrb.mxu2 %v2733_v44 }
 0x306   : > { %2343 = vmatpush.bf16.msrb.mxu2 %v2733_v44 }
 0x307   : > { %v1190_v36 = vpop.f32.mrf.mxu3 }
 0x308   : > { %1278 = vst [vmem:[%s3866_s18 + $0x20] sm:$0xff] %v1190_v36 }
 0x309   : > { %2284 = vmatmul.msk.bf16.gmra.mxu2 %vm3798_vm15, %v2259_v35 }
 0x30f   : > { %v1192_v49 = vpop.f32.mrf.mxu3 }
 0x310   : > { %1280 = vst [vmem:[%s3866_s18 + $0x30] sm:$0xff] %v1192_v49 }
 0x317   : > { %v1195_v60 = vpop.f32.mrf.mxu3 }
 0x318   : > { %1282 = vst [vmem:[%s3866_s18 + $0x40] sm:$0xff] %v1195_v60 }
 0x319   : > { %2287 = vmatmul.msk.bf16.gmra.mxu2 %vm3779_vm5, %v3675_v54 }
 0x31f   : > { %v1197_v45 = vpop.f32.mrf.mxu3 }
 0x320   : > { %1284 = vst [vmem:[%s3866_s18 + $0x50] sm:$0xff] %v1197_v45 }
 0x321   : > { %v1314_v10 = vpop.trf.xlu0 }
 0x322   : > { %1330 = vmatmul.bf16.vlgmr.msrb.gmra.mxu3 %v1314_v10  ;;  %1379 = vmatmul.bf16.vlgmr.msrb.gmra.mxu0 %v1314_v10 }
 0x323   : > { %1428 = vmatmul.bf16.vlgmr.msrb.gmra.mxu1 %v1314_v10 }
 0x327   : > { %v1200_v43 = vpop.f32.mrf.mxu3 }
 0x328   : > { %1286 = vst [vmem:[%s3866_s18 + $0x60] sm:$0xff] %v1200_v43 }
 0x329   : > { %2290 = vmatmul.msk.bf16.gmra.mxu2 %vm3828_vm8, %v3581_v40 }
 0x32c   : > { %v1172_v28 = vpop.f32.mrf.mxu2 }
 0x32d   : > { %1175 = vst [vmem:[%s329_s1] sm:$0x1] %v1172_v28 }
 0x32f   : > { %v1202_v32 = vpop.f32.mrf.mxu3 }
 0x330   : > { %1288 = vst [vmem:[%s3866_s18 + $0x70] sm:$0xff] %v1202_v32 }
 0x331   : > { %v1315_v37 = vpop.trf.xlu0 }
 0x332   : > { %1335 = vmatmul.bf16.gmra.mxu3 %v1315_v37  ;;  %1384 = vmatmul.bf16.gmra.mxu0 %v1315_v37 }
 0x333   : > { %1433 = vmatmul.bf16.gmra.mxu1 %v1315_v37 }
 0x337   : > { %v1205_v48 = vpop.f32.mrf.mxu3 }
 0x338   : > { %1290 = vst [vmem:[%s3866_s18 + $0x80] sm:$0xff] %v1205_v48 }
 0x339   : > { %2293 = vmatmul.msk.bf16.gmra.mxu2 %vm3849_vm12, %v3585_v61 }
 0x33f   : > { %v1207_v9 = vpop.f32.mrf.mxu3 }
 0x340   : > { %1292 = vst [vmem:[%s3866_s18 + $0x90] sm:$0xff] %v1207_v9 }
 0x341   : > { %v1316_v29 = vpop.trf.xlu0 }
 0x342   : > { %1340 = vmatmul.bf16.gmra.mxu3 %v1316_v29  ;;  %1389 = vmatmul.bf16.gmra.mxu0 %v1316_v29 }
 0x343   : > { %1438 = vmatmul.bf16.gmra.mxu1 %v1316_v29 }
 0x347   : > { %v1210_v8 = vpop.f32.mrf.mxu3 }
 0x348   : > { %1294 = vst [vmem:[%s3866_s18 + $0xa0] sm:$0xff] %v1210_v8 }
 0x34c   : > { %v1234_v33 = vpop.f32.mrf.mxu2 }
 0x34d   : > { %1275 = vst [vmem:[%s3866_s18 + $0x8] sm:$0xff] %v1234_v33 }
 0x34f   : > { %v1212_v20 = vpop.f32.mrf.mxu3 }
 0x350   : > { %1296 = vst [vmem:[%s3866_s18 + $0xb0] sm:$0xff] %v1212_v20 }
 0x351   : > { %v1317_v7 = vpop.trf.xlu0 }
 0x352   : > { %1345 = vmatmul.bf16.gmra.mxu3 %v1317_v7  ;;  %1394 = vmatmul.bf16.gmra.mxu0 %v1317_v7 }
 0x353   : > { %1443 = vmatmul.bf16.gmra.mxu1 %v1317_v7 }
 0x354   : > { %v1236_v50 = vpop.f32.mrf.mxu2 }
 0x355   : > { %1277 = vst [vmem:[%s3866_s18 + $0x18] sm:$0xff] %v1236_v50 }
 0x357   : > { %v1215_v40 = vpop.f32.mrf.mxu3 }
 0x358   : > { %1298 = vst [vmem:[%s3866_s18 + $0xc0] sm:$0xff] %v1215_v40 }
 0x35c   : > { %v1239_v61 = vpop.f32.mrf.mxu2 }
 0x35d   : > { %1279 = vst [vmem:[%s3866_s18 + $0x28] sm:$0xff] %v1239_v61 }
 0x35f   : > { %v1217_v51 = vpop.f32.mrf.mxu3 }
 0x360   : > { %1300 = vst [vmem:[%s3866_s18 + $0xd0] sm:$0xff] %v1217_v51 }
 0x361   : > { %v1318_v39 = vpop.trf.xlu0 }
 0x362   : > { %1350 = vmatmul.bf16.gmra.mxu3 %v1318_v39  ;;  %1399 = vmatmul.bf16.gmra.mxu0 %v1318_v39 }
 0x363   : > { %1448 = vmatmul.bf16.gmra.mxu1 %v1318_v39 }
 0x364   : > { %v1241_v24 = vpop.f32.mrf.mxu2 }
 0x365   : > { %1281 = vst [vmem:[%s3866_s18 + $0x38] sm:$0xff] %v1241_v24 }
 0x367   : > { %v1220_v59 = vpop.f32.mrf.mxu3 }
 0x368   : > { %1302 = vst [vmem:[%s3866_s18 + $0xe0] sm:$0xff] %v1220_v59 }
 0x36c   : > { %v1244_v55 = vpop.f32.mrf.mxu2 }
 0x36d   : > { %1283 = vst [vmem:[%s3866_s18 + $0x48] sm:$0xff] %v1244_v55 }
 0x36f   : > { %v1222_v34 = vpop.f32.mrf.mxu3 }
 0x370   : > { %1304 = vst [vmem:[%s3866_s18 + $0xf0] sm:$0xff] %v1222_v34 }
 0x371   : > { %v1319_v56 = vpop.trf.xlu0 }
 0x372   : > { %1355 = vmatmul.bf16.gmra.mxu3 %v1319_v56  ;;  %1404 = vmatmul.bf16.gmra.mxu0 %v1319_v56 }
 0x373   : > { %1453 = vmatmul.bf16.gmra.mxu1 %v1319_v56 }
 0x374   : > { %v1246_v41 = vpop.f32.mrf.mxu2 }
 0x375   : > { %1285 = vst [vmem:[%s3866_s18 + $0x58] sm:$0xff] %v1246_v41 }
 0x37c   : > { %v1249_v47 = vpop.f32.mrf.mxu2 }
 0x37d   : > { %1287 = vst [vmem:[%s3866_s18 + $0x68] sm:$0xff] %v1249_v47 }
 0x381   : > { %v1320_v2 = vpop.trf.xlu0 }
 0x382   : > { %1360 = vmatmul.bf16.gmra.mxu3 %v1320_v2  ;;  %1409 = vmatmul.bf16.vlgmr.msra.gmra.mxu2 %v1320_v2 }
 0x384   : > { %v1251_v54 = vpop.f32.mrf.mxu2 }
 0x385   : > { %1289 = vst [vmem:[%s3866_s18 + $0x78] sm:$0xff] %v1251_v54 }
 0x38c   : > { %v1254_v4 = vpop.f32.mrf.mxu2 }
 0x38d   : > { %1291 = vst [vmem:[%s3866_s18 + $0x88] sm:$0xff] %v1254_v4 }
 0x391   : > { %v1321_v38 = vpop.trf.xlu0 }
 0x392   : > { %1365 = vmatmul.bf16.gmra.mxu3 %v1321_v38  ;;  %1414 = vmatmul.bf16.gmra.mxu2 %v1321_v38 }
 0x394   : > { %v1256_v1 = vpop.f32.mrf.mxu2 }
 0x395   : > { %1293 = vst [vmem:[%s3866_s18 + $0x98] sm:$0xff] %v1256_v1 }
 0x39c   : > { %v1259_v58 = vpop.f32.mrf.mxu2 }
 0x39d   : > { %1295 = vst [vmem:[%s3866_s18 + $0xa8] sm:$0xff] %v1259_v58 }
 0x39f   : > { %v3909_v6 = vpop.f32.mrf.mxu0 }
 0x3a0   : > { %v3911_v18 = vpop.f32.mrf.mxu1 }
 0x3a2   : > { %1458 = vmatmul.bf16.vlgmr.msrb.gmra.mxu2 %v1320_v2 }
 0x3a4   : > { %v1261_v62 = vpop.f32.mrf.mxu2 }
 0x3a5   : > { %1297 = vst [vmem:[%s3866_s18 + $0xb8] sm:$0xff] %v1261_v62  ;;  %v3914_v26 = vpop.f32.mrf.mxu3 }
 0x3a7   : > { %v3916_v52 = vpop.f32.mrf.mxu0 }
 0x3a8   : > { %v3918_v3 = vpop.f32.mrf.mxu1 }
 0x3ac   : > { %v1264_v0 = vpop.f32.mrf.mxu2 }
 0x3ad   : > { %1299 = vst [vmem:[%s3866_s18 + $0xc8] sm:$0xff] %v1264_v0  ;;  %v3921_v25 = vpop.f32.mrf.mxu3 }
 0x3af   : > { %v3923_v57 = vpop.f32.mrf.mxu0 }
 0x3b0   : > { %v3925_v12 = vpop.f32.mrf.mxu1 }
 0x3b2   : > { %1463 = vmatmul.bf16.gmra.mxu2 %v1321_v38 }
 0x3b4   : > { %v1266_v46 = vpop.f32.mrf.mxu2 }
 0x3b5   : > { %1301 = vst [vmem:[%s3866_s18 + $0xd8] sm:$0xff] %v1266_v46  ;;  %v3928_v15 = vpop.f32.mrf.mxu3 }
 0x3b7   : > { %v3930_v27 = vpop.f32.mrf.mxu0 }
 0x3b8   : > { %v3932_v11 = vpop.f32.mrf.mxu1 }
 0x3bc   : > { %v1269_v31 = vpop.f32.mrf.mxu2 }
 0x3bd   : > { %1303 = vst [vmem:[%s3866_s18 + $0xe8] sm:$0xff] %v1269_v31  ;;  %v3935_v30 = vpop.f32.mrf.mxu3 }
 0x3bf   : > { %v3937_v23 = vpop.f32.mrf.mxu0 }
 0x3c0   : > { %v3939_v53 = vpop.f32.mrf.mxu1 }
 0x3c4   : > { %v1271_v5 = vpop.f32.mrf.mxu2 }
 0x3c5   : > { %1305 = vst [vmem:[%s3866_s18 + $0xf8] sm:$0xff] %v1271_v5  ;;  %v3942_v35 = vpop.f32.mrf.mxu3 }
 0x3c7   : > { %v3944_v13 = vpop.f32.mrf.mxu0 }
 0x3c8   : > { %v3946_v22 = vpop.f32.mrf.mxu1 }
 0x3cd   : > { %v3948_v44 = vpop.f32.mrf.mxu3 }
 0x3cf   : > { %v3950_v17 = vpop.f32.mrf.mxu0 }
 0x3d0   : > { %v3952_v21 = vpop.f32.mrf.mxu1 }
 0x3d5   : > { %v3954_v14 = vpop.f32.mrf.mxu3 }
 0x3d7   : > { %v3956_v19 = vpop.f32.mrf.mxu0 }
 0x3d8   : > { %v3958_v63 = vpop.f32.mrf.mxu1 }
 0x3dd   : > { %v3960_v42 = vpop.f32.mrf.mxu3 }
 0x3df   : > { %v3962_v36 = vpop.f32.mrf.mxu0 }
 0x3e0   : > { %v3964_v49 = vpop.f32.mrf.mxu1 }
 0x3e5   : > { %v3966_v60 = vpop.f32.mrf.mxu3 }
 0x3e7   : > { %v3968_v45 = vpop.f32.mrf.mxu0 }
 0x3e8   : > { %v3970_v10 = vpop.f32.mrf.mxu1 }
 0x3ed   : > { %v3972_v43 = vpop.f32.mrf.mxu3 }
 0x3ef   : > { %v3974_v28 = vpop.f32.mrf.mxu0 }
 0x3f0   : > { %v3976_v32 = vpop.f32.mrf.mxu1 }
 0x3f5   : > { %v3978_v37 = vpop.f32.mrf.mxu3 }
 0x3f7   : > { %v3980_v48 = vpop.f32.mrf.mxu0 }
 0x3f8   : > { %v3982_v9 = vpop.f32.mrf.mxu1 }
 0x3fd   : > { %v3984_v29 = vpop.f32.mrf.mxu3 }
 0x405   : > { %v3986_v8 = vpop.f32.mrf.mxu3  ;;  %v3988_v33 = vpop.f32.mrf.mxu2 }
 0x40d   : > { %v3990_v20 = vpop.f32.mrf.mxu3  ;;  %v3992_v50 = vpop.f32.mrf.mxu2 }
 0x415   : > { %v3994_v7 = vpop.f32.mrf.mxu3  ;;  %v3996_v40 = vpop.f32.mrf.mxu2 }
 0x41d   : > { %v3998_v61 = vpop.f32.mrf.mxu3  ;;  %v4000_v51 = vpop.f32.mrf.mxu2 }
 0x425   : > { %v4002_v24 = vpop.f32.mrf.mxu2 }
 0x42d   : > { %v4004_v39 = vpop.f32.mrf.mxu2 }
 0x435   : > { %v4006_v59 = vpop.f32.mrf.mxu2 }
 0x439   : > { %1472 = sbr.rel (%p4341_p2) target bundleno = 1135 (0x46f), region = 44 }
 0x43d   : > { %v4008_v55 = vpop.f32.mrf.mxu2 }
 0x43e   : > { %v2734_v34 = vmov 0.0  }
 0x43f   : > { %1473 = vst [vmem:[#allocation12] sm:$0xff] %v2734_v34 }
 0x440   : > { %1474 = vst [vmem:[#allocation12 + $0x8] sm:$0xff] %v2734_v34 }
 0x441   : > { %1475 = vst [vmem:[#allocation12 + $0x10] sm:$0xff] %v2734_v34 }
 0x442   : > { %1476 = vst [vmem:[#allocation12 + $0x18] sm:$0xff] %v2734_v34 }
 0x443   : > { %1477 = vst [vmem:[#allocation12 + $0x20] sm:$0xff] %v2734_v34 }
 0x444   : > { %1478 = vst [vmem:[#allocation12 + $0x28] sm:$0xff] %v2734_v34 }
 0x445   : > { %1479 = vst [vmem:[#allocation12 + $0x30] sm:$0xff] %v2734_v34 }
 0x446   : > { %1480 = vst [vmem:[#allocation12 + $0x38] sm:$0xff] %v2734_v34 }
 0x447   : > { %1481 = vst [vmem:[#allocation12 + $0x40] sm:$0xff] %v2734_v34 }
 0x448   : > { %1482 = vst [vmem:[#allocation12 + $0x48] sm:$0xff] %v2734_v34 }
 0x449   : > { %1483 = vst [vmem:[#allocation12 + $0x50] sm:$0xff] %v2734_v34 }
 0x44a   : > { %1484 = vst [vmem:[#allocation12 + $0x58] sm:$0xff] %v2734_v34 }
 0x44b   : > { %1485 = vst [vmem:[#allocation12 + $0x60] sm:$0xff] %v2734_v34 }
 0x44c   : > { %1486 = vst [vmem:[#allocation12 + $0x68] sm:$0xff] %v2734_v34 }
 0x44d   : > { %1487 = vst [vmem:[#allocation12 + $0x70] sm:$0xff] %v2734_v34 }
 0x44e   : > { %1488 = vst [vmem:[#allocation12 + $0x78] sm:$0xff] %v2734_v34 }
 0x44f   : > { %1489 = vst [vmem:[#allocation12 + $0x80] sm:$0xff] %v2734_v34 }
 0x450   : > { %1490 = vst [vmem:[#allocation12 + $0x88] sm:$0xff] %v2734_v34 }
 0x451   : > { %1491 = vst [vmem:[#allocation12 + $0x90] sm:$0xff] %v2734_v34 }
 0x452   : > { %1492 = vst [vmem:[#allocation12 + $0x98] sm:$0xff] %v2734_v34 }
 0x453   : > { %1493 = vst [vmem:[#allocation12 + $0xa0] sm:$0xff] %v2734_v34 }
 0x454   : > { %1494 = vst [vmem:[#allocation12 + $0xa8] sm:$0xff] %v2734_v34 }
 0x455   : > { %1495 = vst [vmem:[#allocation12 + $0xb0] sm:$0xff] %v2734_v34 }
 0x456   : > { %1496 = vst [vmem:[#allocation12 + $0xb8] sm:$0xff] %v2734_v34 }
 0x457   : > { %1497 = vst [vmem:[#allocation12 + $0xc0] sm:$0xff] %v2734_v34 }
 0x458   : > { %1498 = vst [vmem:[#allocation12 + $0xc8] sm:$0xff] %v2734_v34 }
 0x459   : > { %1499 = vst [vmem:[#allocation12 + $0xd0] sm:$0xff] %v2734_v34 }
 0x45a   : > { %1500 = vst [vmem:[#allocation12 + $0xd8] sm:$0xff] %v2734_v34 }
 0x45b   : > { %1501 = vst [vmem:[#allocation12 + $0xe0] sm:$0xff] %v2734_v34 }
 0x45c   : > { %1502 = vst [vmem:[#allocation12 + $0xe8] sm:$0xff] %v2734_v34 }
 0x45d   : > { %1503 = vst [vmem:[#allocation12 + $0xf0] sm:$0xff] %v2734_v34 }
 0x45e   : > { %1504 = vst [vmem:[#allocation12 + $0xf8] sm:$0xff] %v2734_v34 }
 0x45f   : > { %1505 = vst.msk [vmem:[#allocation2] sm:$0xff] %vm1138_vm4, %v2734_v34 }
 0x460   : > { %1506 = vst.msk [vmem:[#allocation2 + $0x8] sm:$0xff] %vm1138_vm4, %v2734_v34 }
 0x461   : > { %1507 = vst.msk [vmem:[#allocation2 + $0x10] sm:$0xff] %vm1138_vm4, %v2734_v34 }
 0x462   : > { %1508 = vst.msk [vmem:[#allocation2 + $0x18] sm:$0xff] %vm1138_vm4, %v2734_v34 }
 0x463   : > { %1509 = vst.msk [vmem:[#allocation2 + $0x20] sm:$0xff] %vm1138_vm4, %v2734_v34 }
 0x464   : > { %1510 = vst.msk [vmem:[#allocation2 + $0x28] sm:$0xff] %vm1138_vm4, %v2734_v34 }
 0x465   : > { %1511 = vst.msk [vmem:[#allocation2 + $0x30] sm:$0xff] %vm1138_vm4, %v2734_v34 }
 0x466   : > { %1512 = vst.msk [vmem:[#allocation2 + $0x38] sm:$0xff] %vm1138_vm4, %v2734_v34 }
 0x467   : > { %1513 = vst.msk [vmem:[#allocation2 + $0x40] sm:$0xff] %vm1138_vm4, %v2734_v34 }
 0x468   : > { %1514 = vst.msk [vmem:[#allocation2 + $0x48] sm:$0xff] %vm1138_vm4, %v2734_v34 }
 0x469   : > { %1515 = vst.msk [vmem:[#allocation2 + $0x50] sm:$0xff] %vm1138_vm4, %v2734_v34 }
 0x46a   : > { %1516 = vst.msk [vmem:[#allocation2 + $0x58] sm:$0xff] %vm1138_vm4, %v2734_v34 }
 0x46b   : > { %1517 = vst.msk [vmem:[#allocation2 + $0x60] sm:$0xff] %vm1138_vm4, %v2734_v34 }
 0x46c   : > { %1518 = vst.msk [vmem:[#allocation2 + $0x68] sm:$0xff] %vm1138_vm4, %v2734_v34 }
 0x46d   : > { %1519 = vst.msk [vmem:[#allocation2 + $0x70] sm:$0xff] %vm1138_vm4, %v2734_v34 }
 0x46e   : > { %1520 = vst.msk [vmem:[#allocation2 + $0x78] sm:$0xff] %vm1138_vm4, %v2734_v34 }
 0x46f PF: > { %v1521_v41 = vld [vmem:[#allocation12] sm:$0xff]  ;;  %v1522_v56 = vld [vmem:[#allocation12 + $0x8] sm:$0xff]  ;;  %v1523_v47 = vld [vmem:[#allocation12 + $0x10] sm:$0xff]  ;;  %p2295_p4 = scmp.ne.s32.totalorder %s2803_s28, 1 }
 0x470   : > { %v1553_v54 = vadd.f32 %v1521_v41, %v3914_v26  ;;  %v1554_v2 = vadd.f32 %v1522_v56, %v3909_v6  ;;  %v1555_v4 = vadd.f32 %v1523_v47, %v3921_v25  ;;  %v1524_v1 = vld [vmem:[#allocation12 + $0x18] sm:$0xff]  ;;  %v1525_v38 = vld [vmem:[#allocation12 + $0x20] sm:$0xff]  ;;  %v1526_v58 = vld [vmem:[#allocation12 + $0x28] sm:$0xff] }
 0x471   : > { %v1556_v62 = vadd.f32 %v1524_v1, %v3916_v52  ;;  %v1527_v0 = vld [vmem:[#allocation12 + $0x30] sm:$0xff]  ;;  %v1557_v46 = vadd.f32 %v1525_v38, %v3928_v15  ;;  %v1528_v31 = vld [vmem:[#allocation12 + $0x38] sm:$0xff]  ;;  %v1558_v5 = vadd.f32 %v1526_v58, %v3923_v57  ;;  %v1529_v34 = vld [vmem:[#allocation12 + $0x40] sm:$0xff] }
 0x472   : > { %1585 = vst [vmem:[#allocation12] sm:$0xff] %v1553_v54  ;;  %v1559_v26 = vadd.f32 %v1527_v0, %v3935_v30  ;;  %v1530_v6 = vld [vmem:[#allocation12 + $0x48] sm:$0xff]  ;;  %v1560_v25 = vadd.f32 %v1528_v31, %v3930_v27  ;;  %v1531_v41 = vld [vmem:[#allocation12 + $0x50] sm:$0xff]  ;;  %v1561_v52 = vadd.f32 %v1529_v34, %v3942_v35  ;;  %v1532_v56 = vld [vmem:[#allocation12 + $0x58] sm:$0xff] }
 0x473   : > { %1586 = vst [vmem:[#allocation12 + $0x8] sm:$0xff] %v1554_v2  ;;  %v1562_v15 = vadd.f32 %v1530_v6, %v3937_v23  ;;  %v1533_v47 = vld [vmem:[#allocation12 + $0x60] sm:$0xff]  ;;  %v1563_v57 = vadd.f32 %v1531_v41, %v3948_v44  ;;  %v1534_v54 = vld [vmem:[#allocation12 + $0x68] sm:$0xff]  ;;  %v1564_v30 = vadd.f32 %v1532_v56, %v3944_v13  ;;  %v1535_v2 = vld [vmem:[#allocation12 + $0x70] sm:$0xff] }
 0x474   : > { %1587 = vst [vmem:[#allocation12 + $0x10] sm:$0xff] %v1555_v4  ;;  %v1565_v27 = vadd.f32 %v1533_v47, %v3954_v14  ;;  %v1536_v4 = vld [vmem:[#allocation12 + $0x78] sm:$0xff]  ;;  %v1566_v35 = vadd.f32 %v1534_v54, %v3950_v17  ;;  %v1537_v1 = vld [vmem:[#allocation12 + $0x80] sm:$0xff]  ;;  %v1567_v23 = vadd.f32 %v1535_v2, %v3960_v42  ;;  %v1538_v38 = vld [vmem:[#allocation12 + $0x88] sm:$0xff] }
 0x475   : > { %1588 = vst [vmem:[#allocation12 + $0x18] sm:$0xff] %v1556_v62  ;;  %v1568_v44 = vadd.f32 %v1536_v4, %v3956_v19  ;;  %v1539_v58 = vld [vmem:[#allocation12 + $0x90] sm:$0xff]  ;;  %v1569_v13 = vadd.f32 %v1537_v1, %v3966_v60  ;;  %v1540_v62 = vld [vmem:[#allocation12 + $0x98] sm:$0xff]  ;;  %v1570_v14 = vadd.f32 %v1538_v38, %v3962_v36  ;;  %v1541_v0 = vld [vmem:[#allocation12 + $0xa0] sm:$0xff] }
 0x476   : > { %1589 = vst [vmem:[#allocation12 + $0x20] sm:$0xff] %v1557_v46  ;;  %v1571_v17 = vadd.f32 %v1539_v58, %v3972_v43  ;;  %v1542_v46 = vld [vmem:[#allocation12 + $0xa8] sm:$0xff]  ;;  %v1572_v42 = vadd.f32 %v1540_v62, %v3968_v45  ;;  %v1543_v31 = vld [vmem:[#allocation12 + $0xb0] sm:$0xff]  ;;  %v1573_v19 = vadd.f32 %v1541_v0, %v3978_v37  ;;  %v1545_v34 = vld [vmem:[#allocation12 + $0xc0] sm:$0xff] }
 0x477   : > { %1590 = vst [vmem:[#allocation12 + $0x28] sm:$0xff] %v1558_v5  ;;  %v1544_v5 = vld [vmem:[#allocation12 + $0xb8] sm:$0xff]  ;;  %v1574_v60 = vadd.f32 %v1542_v46, %v3974_v28  ;;  %v1575_v36 = vadd.f32 %v1543_v31, %v3984_v29  ;;  %v1547_v6 = vld [vmem:[#allocation12 + $0xd0] sm:$0xff]  ;;  %v1577_v45 = vadd.f32 %v1545_v34, %v3986_v8  ;;  %v1549_v41 = vld [vmem:[#allocation12 + $0xe0] sm:$0xff] }
 0x478   : > { %1591 = vst [vmem:[#allocation12 + $0x30] sm:$0xff] %v1559_v26  ;;  %v1546_v26 = vld [vmem:[#allocation12 + $0xc8] sm:$0xff]  ;;  %v1576_v43 = vadd.f32 %v1544_v5, %v3980_v48  ;;  %v1579_v28 = vadd.f32 %v1547_v6, %v3990_v20  ;;  %v1551_v56 = vld [vmem:[#allocation12 + $0xf0] sm:$0xff]  ;;  %v1581_v48 = vadd.f32 %v1549_v41, %v3994_v7  ;;  %v1617_v47 = vld [vmem:[#allocation2] sm:$0xff] }
 0x479   : > { %1592 = vst [vmem:[#allocation12 + $0x38] sm:$0xff] %v1560_v25  ;;  %v1548_v25 = vld [vmem:[#allocation12 + $0xd8] sm:$0xff]  ;;  %v1578_v37 = vadd.f32 %v1546_v26, %v3988_v33  ;;  %v1583_v33 = vadd.f32 %v1551_v56, %v3998_v61  ;;  %v1619_v54 = vld [vmem:[#allocation2 + $0x10] sm:$0xff]  ;;  %v1630_v58 = vld [vmem:[#allocation2 + $0x68] sm:$0xff] }
 0x47a   : > { %1593 = vst [vmem:[#allocation12 + $0x40] sm:$0xff] %v1561_v52  ;;  %v1550_v52 = vld [vmem:[#allocation12 + $0xe8] sm:$0xff]  ;;  %v1580_v29 = vadd.f32 %v1548_v25, %v3992_v50  ;;  %v1633_v50 = vadd.f32 %v1617_v47, %v3911_v18  ;;  %v1621_v2 = vld [vmem:[#allocation2 + $0x20] sm:$0xff]  ;;  %v1628_v38 = vld [vmem:[#allocation2 + $0x58] sm:$0xff] }
 0x47b   : > { %1594 = vst [vmem:[#allocation12 + $0x48] sm:$0xff] %v1562_v15  ;;  %v1552_v15 = vld [vmem:[#allocation12 + $0xf8] sm:$0xff]  ;;  %v1582_v8 = vadd.f32 %v1550_v52, %v3996_v40  ;;  %v1635_v40 = vadd.f32 %v1619_v54, %v3925_v12  ;;  %v1623_v4 = vld [vmem:[#allocation2 + $0x30] sm:$0xff]  ;;  %v1626_v12 = vld [vmem:[#allocation2 + $0x48] sm:$0xff] }
 0x47c   : > { %1595 = vst [vmem:[#allocation12 + $0x50] sm:$0xff] %v1563_v57  ;;  %v1618_v57 = vld [vmem:[#allocation2 + $0x8] sm:$0xff]  ;;  %v1584_v20 = vadd.f32 %v1552_v15, %v4000_v51  ;;  %v1637_v51 = vadd.f32 %v1621_v2, %v3939_v53  ;;  %v1625_v1 = vld [vmem:[#allocation2 + $0x40] sm:$0xff]  ;;  %v1632_v62 = vld [vmem:[#allocation2 + $0x78] sm:$0xff] }
 0x47d   : > { %1596 = vst [vmem:[#allocation12 + $0x58] sm:$0xff] %v1564_v30  ;;  %v1620_v30 = vld [vmem:[#allocation2 + $0x18] sm:$0xff]  ;;  %v1634_v7 = vadd.f32 %v1618_v57, %v3918_v3  ;;  %v1639_v3 = vadd.f32 %v1623_v4, %v3952_v21  ;;  %v1641_v53 = vadd.f32 %v1625_v1, %v3964_v49 }
 0x47e   : > { %1597 = vst [vmem:[#allocation12 + $0x60] sm:$0xff] %v1565_v27  ;;  %v1622_v27 = vld [vmem:[#allocation2 + $0x28] sm:$0xff]  ;;  %v1636_v61 = vadd.f32 %v1620_v30, %v3932_v11 }
 0x47f   : > { %1598 = vst [vmem:[#allocation12 + $0x68] sm:$0xff] %v1566_v35  ;;  %v1624_v35 = vld [vmem:[#allocation2 + $0x38] sm:$0xff]  ;;  %v1638_v18 = vadd.f32 %v1622_v27, %v3946_v22  ;;  %v1642_v22 = vadd.f32 %v1626_v12, %v3970_v10  ;;  %v1646_v10 = vadd.f32 %v1630_v58, %v4004_v39 }
 0x480   : > { %1599 = vst [vmem:[#allocation12 + $0x70] sm:$0xff] %v1567_v23  ;;  %v1640_v11 = vadd.f32 %v1624_v35, %v3958_v63  ;;  %v1627_v23 = vld [vmem:[#allocation2 + $0x50] sm:$0xff]  ;;  %v1644_v63 = vadd.f32 %v1628_v38, %v3982_v9 }
 0x481   : > { %1600 = vst [vmem:[#allocation12 + $0x78] sm:$0xff] %v1568_v44  ;;  %v1629_v44 = vld [vmem:[#allocation2 + $0x60] sm:$0xff]  ;;  %v1643_v21 = vadd.f32 %v1627_v23, %v3976_v32  ;;  %v1648_v32 = vadd.f32 %v1632_v62, %v4008_v55 }
 0x482   : > { %1601 = vst [vmem:[#allocation12 + $0x80] sm:$0xff] %v1569_v13  ;;  %v1631_v13 = vld [vmem:[#allocation2 + $0x70] sm:$0xff]  ;;  %v1645_v49 = vadd.f32 %v1629_v44, %v4002_v24 }
 0x483   : > { %1602 = vst [vmem:[#allocation12 + $0x88] sm:$0xff] %v1570_v14  ;;  %v1647_v14 = vadd.f32 %v1631_v13, %v4006_v59 }
 0x484   : > { %1603 = vst [vmem:[#allocation12 + $0x90] sm:$0xff] %v1571_v17 }
 0x485   : > { %1604 = vst [vmem:[#allocation12 + $0x98] sm:$0xff] %v1572_v42 }
 0x486   : > { %1605 = vst [vmem:[#allocation12 + $0xa0] sm:$0xff] %v1573_v19 }
 0x487   : > { %1606 = vst [vmem:[#allocation12 + $0xa8] sm:$0xff] %v1574_v60 }
 0x488   : > { %1607 = vst [vmem:[#allocation12 + $0xb0] sm:$0xff] %v1575_v36 }
 0x489   : > { %1608 = vst [vmem:[#allocation12 + $0xb8] sm:$0xff] %v1576_v43 }
 0x48a   : > { %1609 = vst [vmem:[#allocation12 + $0xc0] sm:$0xff] %v1577_v45 }
 0x48b   : > { %1610 = vst [vmem:[#allocation12 + $0xc8] sm:$0xff] %v1578_v37 }
 0x48c   : > { %1611 = vst [vmem:[#allocation12 + $0xd0] sm:$0xff] %v1579_v28 }
 0x48d   : > { %1612 = vst [vmem:[#allocation12 + $0xd8] sm:$0xff] %v1580_v29 }
 0x48e   : > { %1613 = vst [vmem:[#allocation12 + $0xe0] sm:$0xff] %v1581_v48 }
 0x48f   : > { %1614 = vst [vmem:[#allocation12 + $0xe8] sm:$0xff] %v1582_v8 }
 0x490   : > { %1615 = vst [vmem:[#allocation12 + $0xf0] sm:$0xff] %v1583_v33 }
 0x491   : > { %1616 = vst [vmem:[#allocation12 + $0xf8] sm:$0xff] %v1584_v20 }
 0x492   : > { %1649 = vst.msk [vmem:[#allocation2] sm:$0xff] %vm1138_vm4, %v1633_v50 }
 0x493   : > { %1650 = vst.msk [vmem:[#allocation2 + $0x8] sm:$0xff] %vm1138_vm4, %v1634_v7 }
 0x494   : > { %1651 = vst.msk [vmem:[#allocation2 + $0x10] sm:$0xff] %vm1138_vm4, %v1635_v40 }
 0x495   : > { %1652 = vst.msk [vmem:[#allocation2 + $0x18] sm:$0xff] %vm1138_vm4, %v1636_v61 }
 0x496   : > { %1653 = vst.msk [vmem:[#allocation2 + $0x20] sm:$0xff] %vm1138_vm4, %v1637_v51 }
 0x497   : > { %1654 = vst.msk [vmem:[#allocation2 + $0x28] sm:$0xff] %vm1138_vm4, %v1638_v18 }
 0x498   : > { %1655 = vst.msk [vmem:[#allocation2 + $0x30] sm:$0xff] %vm1138_vm4, %v1639_v3 }
 0x499   : > { %1656 = vst.msk [vmem:[#allocation2 + $0x38] sm:$0xff] %vm1138_vm4, %v1640_v11 }
 0x49a   : > { %1657 = vst.msk [vmem:[#allocation2 + $0x40] sm:$0xff] %vm1138_vm4, %v1641_v53 }
 0x49b   : > { %1658 = vst.msk [vmem:[#allocation2 + $0x48] sm:$0xff] %vm1138_vm4, %v1642_v22 }
 0x49c   : > { %1659 = vst.msk [vmem:[#allocation2 + $0x50] sm:$0xff] %vm1138_vm4, %v1643_v21 }
 0x49d   : > { %1660 = vst.msk [vmem:[#allocation2 + $0x58] sm:$0xff] %vm1138_vm4, %v1644_v63  ;;  %1668 = sbr.rel (%p2295_p4) target bundleno = 1336 (0x538), region = 48 }
 0x49e   : > { %1661 = vst.msk [vmem:[#allocation2 + $0x60] sm:$0xff] %vm1138_vm4, %v1645_v49 }
 0x49f   : > { %1662 = vst.msk [vmem:[#allocation2 + $0x68] sm:$0xff] %vm1138_vm4, %v1646_v10 }
 0x4a0   : > { %1663 = vst.msk [vmem:[#allocation2 + $0x70] sm:$0xff] %vm1138_vm4, %v1647_v14 }
 0x4a1   : > { %1664 = vst.msk [vmem:[#allocation2 + $0x78] sm:$0xff] %vm1138_vm4, %v1648_v32 }
 0x4a2   : > { %v1673_v9 = vld [vmem:[#allocation2 + $0x20] sm:$0xff]  ;;  %v1674_v24 = vld [vmem:[#allocation2 + $0x28] sm:$0xff]  ;;  %v2735_v0 = vmov 0   ;;  %v1675_v55 = vld [vmem:[#allocation2 + $0x30] sm:$0xff]  ;;  %v2736_v46 = vmov 0.0  }
 0x4a3   : > { %v1669_v39 = vld [vmem:[#allocation2] sm:$0xff]  ;;  %2473 = vset.pattern.permute.xlu1 %v2735_v0  ;;  %2462 = vset.pattern.permute.xlu0 %v2735_v0  ;;  %vm1689_vm3 = vcmp.eq.f32.partialorder %v1673_v9, 0.0  ;;  %vm1690_vm10 = vcmp.eq.f32.partialorder %v1674_v24, 0.0  ;;  %v1670_v59 = vld [vmem:[#allocation2 + $0x8] sm:$0xff]  ;;  %v1676_v17 = vld [vmem:[#allocation2 + $0x38] sm:$0xff]  ;;  %vm1691_vm4 = vcmp.eq.f32.partialorder %v1675_v55, 0.0 }
 0x4a4   : > { %vm1685_vm7 = vcmp.eq.f32.partialorder %v1669_v39, 0.0  ;;  %v2300_v42 = vsel %vm1689_vm3, 1.0, %v2736_v46  ;;  %v2301_v31 = vsel %vm1690_vm10, 1.0, %v2736_v46  ;;  %vm1686_vm5 = vcmp.eq.f32.partialorder %v1670_v59, 0.0  ;;  %v1671_v5 = vld [vmem:[#allocation2 + $0x10] sm:$0xff]  ;;  %v1672_v60 = vld [vmem:[#allocation2 + $0x18] sm:$0xff]  ;;  %2484 = vset.pattern.permute.xlu2 %v2735_v0 }
 0x4a5   : > { %v2296_v19 = vsel %vm1685_vm7, 1.0, %v2736_v46  ;;  %v2474_v34 = vpack.i.bf16 %v2301_v31, %v2300_v42  ;;  %v2297_v36 = vsel %vm1686_vm5, 1.0, %v2736_v46  ;;  %vm1692_vm13 = vcmp.eq.f32.partialorder %v1676_v17, 0.0  ;;  %v1677_v43 = vld [vmem:[#allocation2 + $0x40] sm:$0xff]  ;;  %v1678_v6 = vld [vmem:[#allocation2 + $0x48] sm:$0xff]  ;;  %v1679_v28 = vld [vmem:[#allocation2 + $0x50] sm:$0xff] }
 0x4a6   : > { %v2463_v26 = vpack.i.bf16 %v2297_v36, %v2296_v19  ;;  %vm1687_vm1 = vcmp.eq.f32.partialorder %v1671_v5, 0.0  ;;  %vm1688_vm2 = vcmp.eq.f32.partialorder %v1672_v60, 0.0  ;;  %v2302_v45 = vsel %vm1691_vm4, 1.0, %v2736_v46  ;;  %v1680_v52 = vld [vmem:[#allocation2 + $0x58] sm:$0xff]  ;;  %v1681_v15 = vld [vmem:[#allocation2 + $0x60] sm:$0xff]  ;;  %v1682_v8 = vld [vmem:[#allocation2 + $0x68] sm:$0xff] }
 0x4a7   : > { %2475 = vperm.xlu1 %2473, %v2474_v34   ;;  %v2303_v25 = vsel %vm1692_vm13, 1.0, %v2736_v46  ;;  %v2298_v37 = vsel %vm1687_vm1, 1.0, %v2736_v46  ;;  %v2299_v41 = vsel %vm1688_vm2, 1.0, %v2736_v46  ;;  %v1683_v29 = vld [vmem:[#allocation2 + $0x70] sm:$0xff]  ;;  %vm1693_vm15 = vcmp.eq.f32.partialorder %v1677_v43, 0.0  ;;  %v1749_v1 = vld [vmem:[#allocation12 + $0x80] sm:$0xff] }
 0x4a8   : > { %2464 = vperm.xlu0 %2462, %v2463_v26   ;;  %v1684_v56 = vld [vmem:[#allocation2 + $0x78] sm:$0xff]  ;;  %vm1694_vm0 = vcmp.eq.f32.partialorder %v1678_v6, 0.0  ;;  %v2479_v48 = vpack.i.bf16 %v2303_v25, %v2302_v45  ;;  %v2304_v47 = vsel %vm1693_vm15, 1.0, %v2736_v46  ;;  %v2468_v57 = vpack.i.bf16 %v2299_v41, %v2298_v37  ;;  %v1750_v11 = vld [vmem:[#allocation12 + $0x88] sm:$0xff]  ;;  %v1753_v9 = vld [vmem:[#allocation12 + $0xa0] sm:$0xff] }
 0x4a9   : > { %v2305_v33 = vsel %vm1694_vm0, 1.0, %v2736_v46  ;;  %vm1695_vm9 = vcmp.eq.f32.partialorder %v1679_v28, 0.0  ;;  %vm1696_vm6 = vcmp.eq.f32.partialorder %v1680_v52, 0.0  ;;  %vm1699_vm8 = vcmp.eq.f32.partialorder %v1683_v29, 0.0  ;;  %v1751_v3 = vld [vmem:[#allocation12 + $0x90] sm:$0xff]  ;;  %v1752_v12 = vld [vmem:[#allocation12 + $0x98] sm:$0xff] }
 0x4aa   : > { %v2485_v20 = vpack.i.bf16 %v2305_v33, %v2304_v47  ;;  %vm1700_vm14 = vcmp.eq.f32.partialorder %v1684_v56, 0.0  ;;  %vm1697_vm11 = vcmp.eq.f32.partialorder %v1681_v15, 0.0  ;;  %vm1698_vm12 = vcmp.eq.f32.partialorder %v1682_v8, 0.0  ;;  %v4342_v53 = vld [vmem:[#allocation37_spill] sm:$0xff]  ;;  %v4344_v21 = vld [vmem:[#allocation36_spill] sm:$0xff]  ;;  %v4346_v55 = vld [vmem:[#allocation31_spill] sm:$0xff] }
 0x4ab   : > { %v2306_v54 = vsel %vm1695_vm9, 1.0, %v2736_v46  ;;  %v2307_v50 = vsel %vm1696_vm6, 1.0, %v2736_v46  ;;  %v2310_v30 = vsel %vm1699_vm8, 1.0, %v2736_v46  ;;  %v2311_v7 = vsel %vm1700_vm14, 1.0, %v2736_v46  ;;  %v4343_v22 = vld [vmem:[#allocation29_spill] sm:$0xff]  ;;  %v1754_v39 = vld [vmem:[#allocation12 + $0xa8] sm:$0xff] }
 0x4ac   : > { %2486 = vperm.xlu2 %2484, %v2485_v20   ;;  %v2308_v2 = vsel %vm1697_vm11, 1.0, %v2736_v46  ;;  %v2309_v40 = vsel %vm1698_vm12, 1.0, %v2736_v46  ;;  %v2490_v27 = vpack.i.bf16 %v2307_v50, %v2306_v54  ;;  %v2500_v61 = vpack.i.bf16 %v2311_v7, %v2310_v30  ;;  %v1755_v24 = vld [vmem:[#allocation12 + $0xb0] sm:$0xff]  ;;  %v4345_v0 = vld [vmem:[#allocation28_spill] sm:$0xff]  ;;  %v4347_v46 = vld [vmem:[#allocation27_spill] sm:$0xff] }
 0x4ad   : > { %v2495_v4 = vpack.i.bf16 %v2309_v40, %v2308_v2  ;;  %v4348_v31 = vld [vmem:[#allocation30_spill] sm:$0xff]  ;;  %v1741_v25 = vld [vmem:[#allocation12 + $0x40] sm:$0xff]  ;;  %v1743_v37 = vld [vmem:[#allocation12 + $0x50] sm:$0xff] }
 0x4ae   : > { %v1744_v41 = vld [vmem:[#allocation12 + $0x58] sm:$0xff]  ;;  %v1742_v29 = vld [vmem:[#allocation12 + $0x48] sm:$0xff]  ;;  %v4349_v56 = vld [vmem:[#allocation35_spill] sm:$0xff] }
 0x4af   : > { %2480 = vperm.xlu1 %2473, %v2479_v48   ;;  %v4350_v15 = vld [vmem:[#allocation45_spill] sm:$0xff]  ;;  %v4351_v47 = vld [vmem:[#allocation34_spill] sm:$0xff] }
 0x4b0   : > { %2469 = vperm.xlu0 %2462, %v2468_v57   ;;  %v4352_v57 = vld [vmem:[#allocation44_spill] sm:$0xff]  ;;  %v1735_v54 = vld [vmem:[#allocation12 + $0x10] sm:$0xff] }
 0x4b1   : > { %v4353_v50 = vld [vmem:[#allocation41_spill] sm:$0xff] }
 0x4b2   : > { %v4354_v7 = vld [vmem:[#allocation49_spill] sm:$0xff] }
 0x4b4   : > { %2491 = vperm.xlu2 %2484, %v2490_v27  }
 0x4b7   : > { %2501 = vperm.xlu1 %2473, %v2500_v61  }
 0x4b8   : > { %2496 = vperm.xlu0 %2462, %v2495_v4   ;;  %v1736_v4 = vld [vmem:[#allocation12 + $0x18] sm:$0xff] }
 0x506   : > { %v2487_v51 = vpop.permute.xlu2 %2486 }
 0x507   : > { %v2489_v35 = vunpack.i.h.bf16 %v2487_v51  ;;  %v2488_v18 = vunpack.i.l.bf16 %v2487_v51  ;;  %v4355_v51 = vld [vmem:[#allocation40_spill] sm:$0xff] }
 0x509   : > { %v1863_v23 = vmul.f32 %v2489_v35, %v2937_v16  ;;  %v1864_v38 = vmul.f32 %v2489_v35, %v4342_v53  ;;  %v1861_v44 = vmul.f32 %v2488_v18, %v4343_v22  ;;  %v1862_v58 = vmul.f32 %v2488_v18, %v4344_v21  ;;  %v1756_v16 = vld [vmem:[#allocation12 + $0xb8] sm:$0xff] }
 0x50b   : > { %v1895_v63 = vadd.f32 %v1863_v23, %v1751_v3  ;;  %v1896_v13 = vadd.f32 %v1864_v38, %v1752_v12  ;;  %v1893_v49 = vadd.f32 %v1861_v44, %v1749_v1  ;;  %v1894_v62 = vadd.f32 %v1862_v58, %v1750_v11  ;;  %v1733_v1 = vld [vmem:[#allocation12] sm:$0xff]  ;;  %v4356_v3 = vld [vmem:[#allocation48_spill] sm:$0xff] }
 0x50c   : > { %v1734_v11 = vld [vmem:[#allocation12 + $0x8] sm:$0xff] }
 0x50d   : > { %1927 = vst [vmem:[#allocation12 + $0x90] sm:$0xff] %v1895_v63 }
 0x50e   : > { %1928 = vst [vmem:[#allocation12 + $0x98] sm:$0xff] %v1896_v13  ;;  %v2492_v10 = vpop.permute.xlu2 %2491  ;;  %v1745_v13 = vld [vmem:[#allocation12 + $0x60] sm:$0xff] }
 0x50f   : > { %1925 = vst [vmem:[#allocation12 + $0x80] sm:$0xff] %v1893_v49  ;;  %v2494_v14 = vunpack.i.h.bf16 %v2492_v10  ;;  %v2493_v32 = vunpack.i.l.bf16 %v2492_v10  ;;  %v1747_v49 = vld [vmem:[#allocation12 + $0x70] sm:$0xff] }
 0x510   : > { %1926 = vst [vmem:[#allocation12 + $0x88] sm:$0xff] %v1894_v62  ;;  %v1748_v62 = vld [vmem:[#allocation12 + $0x78] sm:$0xff] }
 0x511   : > { %v1867_v59 = vmul.f32 %v2494_v14, %v4345_v0  ;;  %v1868_v17 = vmul.f32 %v2494_v14, %v4346_v55  ;;  %v1865_v42 = vmul.f32 %v2493_v32, %v4347_v46  ;;  %v1866_v19 = vmul.f32 %v2493_v32, %v4348_v31  ;;  %v1746_v32 = vld [vmem:[#allocation12 + $0x68] sm:$0xff]  ;;  %v4360_v55 = vld [vmem:[#allocation42_spill] sm:$0xff]  ;;  %v1739_v46 = vld [vmem:[#allocation12 + $0x30] sm:$0xff] }
 0x512   : > { %v4359_v0 = vld [vmem:[#allocation32_spill] sm:$0xff] }
 0x513   : > { %v1899_v5 = vadd.f32 %v1867_v59, %v1755_v24  ;;  %v1900_v60 = vadd.f32 %v1868_v17, %v1756_v16  ;;  %v1897_v34 = vadd.f32 %v1865_v42, %v1753_v9  ;;  %v1898_v36 = vadd.f32 %v1866_v19, %v1754_v39  ;;  %v4357_v9 = vld [vmem:[#allocation33_spill] sm:$0xff]  ;;  %v4358_v16 = vld [vmem:[#allocation43_spill] sm:$0xff] }
 0x514   : > { %v4361_v42 = vld [vmem:[#allocation39_spill] sm:$0xff] }
 0x515   : > { %1931 = vst [vmem:[#allocation12 + $0xb0] sm:$0xff] %v1899_v5  ;;  %v4362_v19 = vld [vmem:[#allocation47_spill] sm:$0xff] }
 0x516   : > { %1932 = vst [vmem:[#allocation12 + $0xb8] sm:$0xff] %v1900_v60 }
 0x517   : > { %1929 = vst [vmem:[#allocation12 + $0xa0] sm:$0xff] %v1897_v34 }
 0x518   : > { %1930 = vst [vmem:[#allocation12 + $0xa8] sm:$0xff] %v1898_v36 }
 0x519   : > { %v2476_v26 = vpop.permute.xlu1 %2475 }
 0x51a   : > { %v2478_v43 = vunpack.i.h.bf16 %v2476_v26  ;;  %v2477_v6 = vunpack.i.l.bf16 %v2476_v26  ;;  %v2465_v45 = vpop.permute.xlu0 %2464  ;;  %v1740_v26 = vld [vmem:[#allocation12 + $0x38] sm:$0xff] }
 0x51b   : > { %v2467_v28 = vunpack.i.h.bf16 %v2465_v45  ;;  %v2466_v52 = vunpack.i.l.bf16 %v2465_v45 }
 0x51c   : > { %v1855_v48 = vmul.f32 %v2478_v43, %v4349_v56  ;;  %v1856_v8 = vmul.f32 %v2478_v43, %v4350_v15  ;;  %v1853_v33 = vmul.f32 %v2477_v6, %v4351_v47  ;;  %v1854_v20 = vmul.f32 %v2477_v6, %v4352_v57  ;;  %v4363_v43 = vld [vmem:[#allocation38_spill] sm:$0xff]  ;;  %v1761_v57 = vld [vmem:[#allocation12 + $0xe0] sm:$0xff] }
 0x51d   : > { %v1847_v30 = vmul.f32 %v2467_v28, %v4353_v50  ;;  %v1848_v2 = vmul.f32 %v2467_v28, %v4354_v7  ;;  %v1845_v35 = vmul.f32 %v2466_v52, %v4355_v51  ;;  %v1846_v12 = vmul.f32 %v2466_v52, %v4356_v3  ;;  %v1738_v28 = vld [vmem:[#allocation12 + $0x28] sm:$0xff] }
 0x51e   : > { %v1887_v40 = vadd.f32 %v1855_v48, %v1743_v37  ;;  %v1888_v27 = vadd.f32 %v1856_v8, %v1744_v41  ;;  %v1885_v61 = vadd.f32 %v1853_v33, %v1741_v25  ;;  %v1886_v18 = vadd.f32 %v1854_v20, %v1742_v29  ;;  %v1737_v25 = vld [vmem:[#allocation12 + $0x20] sm:$0xff]  ;;  %v4364_v37 = vld [vmem:[#allocation46_spill] sm:$0xff]  ;;  %v1763_v20 = vld [vmem:[#allocation12 + $0xf0] sm:$0xff] }
 0x51f   : > { %v1879_v23 = vadd.f32 %v1847_v30, %v1735_v54  ;;  %v1880_v53 = vadd.f32 %v1848_v2, %v1736_v4  ;;  %v1877_v22 = vadd.f32 %v1845_v35, %v1733_v1  ;;  %v1878_v63 = vadd.f32 %v1846_v12, %v1734_v11  ;;  %v1764_v54 = vld [vmem:[#allocation12 + $0xf8] sm:$0xff]  ;;  %v1762_v7 = vld [vmem:[#allocation12 + $0xe8] sm:$0xff]  ;;  %v4367_v4 = vld [vmem:[#allocation19_spill] sm:$0xff] }
 0x520   : > { %1919 = vst [vmem:[#allocation12 + $0x50] sm:$0xff] %v1887_v40  ;;  %v4365_v2 = vld [vmem:[#allocation20_spill] sm:$0xff]  ;;  %v4368_v35 = vld [vmem:[#allocation21_spill] sm:$0xff]  ;;  %v4370_v11 = vld [vmem:[#allocation26_spill] sm:$0xff] }
 0x521   : > { %1920 = vst [vmem:[#allocation12 + $0x58] sm:$0xff] %v1888_v27  ;;  %v2481_v38 = vpop.permute.xlu1 %2480  ;;  %v4366_v27 = vld [vmem:[#allocation22_spill] sm:$0xff]  ;;  %v1759_v1 = vld [vmem:[#allocation12 + $0xd0] sm:$0xff]  ;;  %v4369_v3 = vld [vmem:[#allocation24_spill] sm:$0xff] }
 0x522   : > { %1917 = vst [vmem:[#allocation12 + $0x40] sm:$0xff] %v1885_v61  ;;  %v2483_v44 = vunpack.i.h.bf16 %v2481_v38  ;;  %v2482_v21 = vunpack.i.l.bf16 %v2481_v38  ;;  %v2470_v58 = vpop.permute.xlu0 %2469 }
 0x523   : > { %1918 = vst [vmem:[#allocation12 + $0x48] sm:$0xff] %v1886_v18  ;;  %v2472_v10 = vunpack.i.h.bf16 %v2470_v58  ;;  %v2471_v14 = vunpack.i.l.bf16 %v2470_v58 }
 0x524   : > { %1911 = vst [vmem:[#allocation12 + $0x10] sm:$0xff] %v1879_v23  ;;  %v1859_v24 = vmul.f32 %v2483_v44, %v4357_v9  ;;  %v1860_v39 = vmul.f32 %v2483_v44, %v4358_v16  ;;  %v1857_v59 = vmul.f32 %v2482_v21, %v4359_v0  ;;  %v1858_v17 = vmul.f32 %v2482_v21, %v4360_v55  ;;  %v1760_v44 = vld [vmem:[#allocation12 + $0xd8] sm:$0xff]  ;;  %v4371_v21 = vld [vmem:[#allocation23_spill] sm:$0xff] }
 0x525   : > { %1912 = vst [vmem:[#allocation12 + $0x18] sm:$0xff] %v1880_v53  ;;  %v1851_v31 = vmul.f32 %v2472_v10, %v4361_v42  ;;  %v1852_v5 = vmul.f32 %v2472_v10, %v4362_v19  ;;  %v1849_v6 = vmul.f32 %v2471_v14, %v4363_v43  ;;  %v1850_v41 = vmul.f32 %v2471_v14, %v4364_v37  ;;  %v1758_v10 = vld [vmem:[#allocation12 + $0xc8] sm:$0xff] }
 0x526   : > { %1909 = vst [vmem:[#allocation12] sm:$0xff] %v1877_v22  ;;  %v1891_v60 = vadd.f32 %v1859_v24, %v1747_v49  ;;  %v1892_v34 = vadd.f32 %v1860_v39, %v1748_v62  ;;  %v1889_v36 = vadd.f32 %v1857_v59, %v1745_v13  ;;  %v1890_v45 = vadd.f32 %v1858_v17, %v1746_v32  ;;  %v1757_v13 = vld [vmem:[#allocation12 + $0xc0] sm:$0xff]  ;;  %v4372_v49 = vld [vmem:[#allocation25_spill] sm:$0xff] }
 0x527   : > { %1910 = vst [vmem:[#allocation12 + $0x8] sm:$0xff] %v1878_v63  ;;  %v1883_v52 = vadd.f32 %v1851_v31, %v1739_v46  ;;  %v1884_v29 = vadd.f32 %v1852_v5, %v1740_v26  ;;  %v1881_v48 = vadd.f32 %v1849_v6, %v1737_v25  ;;  %v1882_v33 = vadd.f32 %v1850_v41, %v1738_v28 }
 0x528   : > { %1923 = vst [vmem:[#allocation12 + $0x70] sm:$0xff] %v1891_v60 }
 0x529   : > { %1924 = vst [vmem:[#allocation12 + $0x78] sm:$0xff] %v1892_v34  ;;  %v2502_v56 = vpop.permute.xlu1 %2501 }
 0x52a   : > { %1921 = vst [vmem:[#allocation12 + $0x60] sm:$0xff] %v1889_v36  ;;  %v2504_v15 = vunpack.i.h.bf16 %v2502_v56  ;;  %v2503_v8 = vunpack.i.l.bf16 %v2502_v56  ;;  %v2497_v47 = vpop.permute.xlu0 %2496 }
 0x52b   : > { %1922 = vst [vmem:[#allocation12 + $0x68] sm:$0xff] %v1890_v45  ;;  %v2499_v50 = vunpack.i.h.bf16 %v2497_v47  ;;  %v2498_v30 = vunpack.i.l.bf16 %v2497_v47 }
 0x52c   : > { %1915 = vst [vmem:[#allocation12 + $0x30] sm:$0xff] %v1883_v52  ;;  %v1875_v40 = vmul.f32 %v2504_v15, %v4365_v2  ;;  %v1876_v61 = vmul.f32 %v2504_v15, %v4366_v27  ;;  %v1873_v51 = vmul.f32 %v2503_v8, %v4367_v4  ;;  %v1874_v18 = vmul.f32 %v2503_v8, %v4368_v35 }
 0x52d   : > { %1916 = vst [vmem:[#allocation12 + $0x38] sm:$0xff] %v1884_v29  ;;  %v1871_v12 = vmul.f32 %v2499_v50, %v4369_v3  ;;  %v1872_v23 = vmul.f32 %v2499_v50, %v4370_v11  ;;  %v1869_v58 = vmul.f32 %v2498_v30, %v4371_v21  ;;  %v1870_v62 = vmul.f32 %v2498_v30, %v4372_v49 }
 0x52e   : > { %1913 = vst [vmem:[#allocation12 + $0x20] sm:$0xff] %v1881_v48  ;;  %v1907_v53 = vadd.f32 %v1875_v40, %v1763_v20  ;;  %v1908_v38 = vadd.f32 %v1876_v61, %v1764_v54  ;;  %v1905_v22 = vadd.f32 %v1873_v51, %v1761_v57  ;;  %v1906_v63 = vadd.f32 %v1874_v18, %v1762_v7 }
 0x52f   : > { %1914 = vst [vmem:[#allocation12 + $0x28] sm:$0xff] %v1882_v33  ;;  %v1903_v14 = vadd.f32 %v1871_v12, %v1759_v1  ;;  %v1904_v32 = vadd.f32 %v1872_v23, %v1760_v44  ;;  %v1901_v9 = vadd.f32 %v1869_v58, %v1757_v13  ;;  %v1902_v24 = vadd.f32 %v1870_v62, %v1758_v10 }
 0x530   : > { %1939 = vst [vmem:[#allocation12 + $0xf0] sm:$0xff] %v1907_v53 }
 0x531   : > { %1940 = vst [vmem:[#allocation12 + $0xf8] sm:$0xff] %v1908_v38 }
 0x532   : > { %1937 = vst [vmem:[#allocation12 + $0xe0] sm:$0xff] %v1905_v22 }
 0x533   : > { %1938 = vst [vmem:[#allocation12 + $0xe8] sm:$0xff] %v1906_v63 }
 0x534   : > { %1935 = vst [vmem:[#allocation12 + $0xd0] sm:$0xff] %v1903_v14 }
 0x535   : > { %1936 = vst [vmem:[#allocation12 + $0xd8] sm:$0xff] %v1904_v32 }
 0x536   : > { %1933 = vst [vmem:[#allocation12 + $0xc0] sm:$0xff] %v1901_v9 }
 0x537   : > { %1934 = vst [vmem:[#allocation12 + $0xc8] sm:$0xff] %v1902_v24 }
 0x538 PF: > { %s1951_s17 = sand.u32 1, %s2803_s28   ;;  %s1986_s30 = scalar_lea.hbm %s4212_s5, %s2803_s28 }
 0x539   : > { %s1988_s12 = sshll.u32 %s329_s1, 4  ;;  %s1990_s14 = sshll.u32 %s1986_s30, 4  ;;  %s1989_s12 = int_to_ptr.vmem [resolvable:$true] %s1988_s12  ;;  %s1991_s14 = int_to_ptr.hbm [resolvable:$true] %s1990_s14 }
 0x53a   : > { %s4132_s9 = scalar_lea.sflag [#allocation10], %s1951_s17  ;;  %s2579_s13 = sshra.s32 %s1991_s14, 4  ;;  %s2580_s13 = int_to_ptr.hbm [resolvable:$true] %s2579_s13 }
 0x53b   : > { %s2581_s11 = scalar_lea.hbm %s2580_s13, 1  ;;  %s2585_s0 = scalar_lea.hbm %s4212_s5, 2 }
 0x53c   : > { %p2582_p8 = scmp.ne.s32.totalorder %s2580_s13, %s2581_s11  ;;  %p2586_p11 = scmp.lt.s32.totalorder %s2580_s13, %s4212_s5 }
 0x53d   : > { %p2587_p13 = scmp.lt.s32.totalorder %s2585_s0, %s2581_s11 }
 0x53e   : > { %p2583_p9 = pnand %p2582_p8, %p2854_p5 }
 0x53f   : > { %p2588_p0 = por %p2587_p13, %p2586_p11 }
 0x540   : > { %p2584_p12 = pneg %p2583_p9 }
 0x542   : > { %p2589_p3 = pnand %p2588_p0, %p2584_p12 }
 0x544   : > { %2592 = shalt.err (!%p2589_p3)
}
 0x545   : > { %2351 = dma.vmem_to_hbm [thread:$0]  (%p2854_p5), %s1989_s12, 16, %s1991_s14, %s4132_s9  }
 0x546   : > { %s4373_s1 = sshll.u32 %s2803_s28, 7  ;;  %s1968_s22 = sshll.u32 %s3264_s16, 4  ;;  %s1969_s22 = int_to_ptr.vmem [resolvable:$true] %s1968_s22 }
 0x547   : > { %s1967_s30 = scalar_lea.hbm %s4210_s3, %s4373_s1  ;;  %s2327_s13 = sshll.u32 %s2803_s28, 8 }
 0x548   : > { %s1970_s0 = sshll.u32 %s1967_s30, 4  ;;  %s1942_s11 = scalar_lea.sflag [#allocation5], %s2884_s23  ;;  %s1971_s0 = int_to_ptr.hbm [resolvable:$true] %s1970_s0 }
 0x549   : > { %s2607_s10 = sshra.s32 %s1971_s0, 4  ;;  %s2613_s14 = scalar_lea.hbm %s4210_s3, 256  ;;  %s2608_s10 = int_to_ptr.hbm [resolvable:$true] %s2607_s10 }
 0x54a   : > { %s2609_s29 = scalar_lea.hbm %s2608_s10, 128  ;;  %p2614_p2 = scmp.lt.s32.totalorder %s2608_s10, %s4210_s3 }
 0x54b   : > { %p2610_p7 = scmp.ne.s32.totalorder %s2608_s10, %s2609_s29  ;;  %p2615_p4 = scmp.lt.s32.totalorder %s2613_s14, %s2609_s29 }
 0x54d   : > { %p2611_p10 = pnand %p2610_p7, %p2854_p5  ;;  %p2616_p8 = por %p2615_p4, %p2614_p2 }
 0x54f   : > { %p2612_p1 = pneg %p2611_p10 }
 0x551   : > { %p2617_p9 = pnand %p2616_p8, %p2612_p1 }
 0x553   : > { %2620 = shalt.err (!%p2617_p9)
}
 0x554   : > { %s2737_s23 = smov 128   ;;  %s2738_s16 = smov 8  }
 0x555   : > { %2350 = dma.vmem_to_hbm [thread:$0]  (%p2854_p5), %s1969_s22, 2048, %s1971_s0, %s1942_s11, %s2737_s23, %s2737_s23, %s2738_s16  }
 0x556   : > { %s2002_s2 = scalar_lea.hbm %s4213_s6, %s2327_s13  ;;  %s2003_s30 = sshll.u32 %s3866_s18, 4  ;;  %s2004_s30 = int_to_ptr.vmem [resolvable:$true] %s2003_s30 }
 0x557   : > { %s2005_s12 = sshll.u32 %s2002_s2, 4  ;;  %s2641_s19 = scalar_lea.hbm %s4213_s6, 512  ;;  %s2006_s12 = int_to_ptr.hbm [resolvable:$true] %s2005_s12 }
 0x558   : > { %s2635_s4 = sshra.s32 %s2006_s12, 4  ;;  %s2636_s4 = int_to_ptr.hbm [resolvable:$true] %s2635_s4 }
 0x559   : > { %s2637_s10 = scalar_lea.hbm %s2636_s4, 256  ;;  %p2642_p0 = scmp.lt.s32.totalorder %s2636_s4, %s4213_s6 }
 0x55a   : > { %p2638_p12 = scmp.ne.s32.totalorder %s2636_s4, %s2637_s10  ;;  %p2643_p3 = scmp.lt.s32.totalorder %s2641_s19, %s2637_s10 }
 0x55c   : > { %p2639_p11 = pnand %p2638_p12, %p2854_p5  ;;  %p2644_p7 = por %p2643_p3, %p2642_p0 }
 0x55e   : > { %p2640_p13 = pneg %p2639_p11 }
 0x560   : > { %p2645_p10 = pnand %p2644_p7, %p2640_p13 }
 0x562   : > { %2648 = shalt.err (!%p2645_p10)
}
 0x563   : > { %s2739_s18 = smov 256   ;;  %s2740_s13 = smov 16  }
 0x564   : > { %2352 = dma.vmem_to_hbm [thread:$0]  (%p2854_p5), %s2004_s30, 4096, %s2006_s12, %s4132_s9, %s2739_s18, %s2739_s18, %s2740_s13  }
 0x565   : > { %s2741_s11 = smov [#allocation12]   ;;  %s2019_s17 = sshll.u32 %s4214_s7, 4  ;;  %s2020_s17 = int_to_ptr.hbm [resolvable:$true] %s2019_s17 }
 0x566   : > { %s2017_s23 = sshll.u32 %s2741_s11, 4  ;;  %p4374_p1 = scmp.eq.s32.totalorder %s2803_s28, 1  ;;  %s2018_s23 = int_to_ptr.vmem [resolvable:$true] %s2017_s23 }
 0x568   : > { %2354 = dma.vmem_to_hbm [thread:$0]  (%p4374_p1), %s2018_s23, 4096, %s2020_s17, [#allocation13], %s2739_s18, %s2739_s18, %s2740_s13  }
 0x569   : > { %p4375_p2 = pmov %p4374_p1 }
 0x56a   : > { %p4376_p4 = pmov %p4374_p1 }
 0x56b   : > { %2702 = dma.done.wait (%p4375_p2), [#allocation13], 4096  }
 0x56c   : > { %2704 = vsyncadd (%p4376_p4), [#allocation13], 4294963200 }
 0x56d PF: > { %s2039_s21 = sand.u32 1, %s2715_s24   ;;  %p4377_p5 = scmp.ge.s32.totalorder %s2727_s27, 2 }
 0x56e   : > { %s2040_s9 = scalar_lea.sflag [#allocation5], %s2039_s21 }
 0x56f   : > { %p2369_p8 = pnand %p4377_p5, %p2819_p6 }
 0x571   : > { %p2370_p9 = pneg %p2369_p8 }
 0x573   : > { %2706 = dma.done.wait (%p2370_p9), %s2040_s9, 2048  }
 0x574   : > { %2708 = vsyncadd (%p2370_p9), %s2040_s9, 4294965248  ;;  %s4378_s2 = sadd.s32 4294967294, %s2727_s27  }
 0x575   : > { %s2057_s30 = sand.u32 1, %s4378_s2  }
 0x576   : > { %s2058_s12 = scalar_lea.sflag [#allocation10], %s2057_s30 }
 0x577   : > { %2710 = dma.done.wait (%p2370_p9), %s2058_s12, 4112  }
 0x578   : > { %2712 = vsyncadd (%p2370_p9), %s2058_s12, 4294963184  ;;  %p26_p12 = scmp.ge.s32.totalorder %s2838_s15, 4   ;;  %s4379_s24 = smov %s2719_s25 }
 0x579   : > { %s4380_s25 = smov %s2723_s26  ;;  %s4381_s26 = smov %s2850_s20 }
 0x57a   : > { %s4382_s27 = smov %s2838_s15  ;;  %28 = sbr.rel (!%p26_p12) target bundleno = 14 (0xe), region = 141 }
 0x57f   :  { %2073 = vsyncpa [#allocation4], 1 }
 0x580   :  { %2075 = vsyncpa [#allocation4 + $0x1], 1 }
 0x581   :  { %2076 = vsyncpa [#allocation7], 1 }
 0x582   :  { %2077 = vsyncpa [#allocation5], 1 }
 0x583   :  { %2079 = vsyncpa [#allocation5 + $0x1], 1 }
 0x584   :  { %2080 = vsyncpa [#allocation10], 1 }
 0x585   :  { %2082 = vsyncpa [#allocation10 + $0x1], 1 }
 0x586   :  { %2083 = vsyncpa [#allocation13], 1 }

</bundles_post_ra>
